<compile_context>
chip_gen: v5e
topology: v5e:2x2
jax: 0.10.0
libtpu: 0.0.40
codegen_flags: <defaults>
</compile_context>

<pallas_src>
import jax
import jax.numpy as jnp
from jax import lax
from jax.experimental import pallas as pl
from jax.experimental.pallas import tpu as pltpu


def _mask_disc_kernel(
    inputs_ref,     # (seq, bb, input_dim)      VMEM
    deltas_ref,     # (seq, bb, 1)              VMEM
    wx_ref,         # (input_dim, 4*hidden)     VMEM   gate blocks [i | f | o | g]
    wh_ref,         # (hidden,    4*hidden)     VMEM
    b_ref,          # (1,         4*hidden)     VMEM
    wd_ref,         # (hidden, hidden)          VMEM   short-term projection
    bd_ref,         # (1, hidden)               VMEM
    wl_ref,         # (hidden, output_dim)      VMEM   final Linear
    bl_ref,         # (1, output_dim)           VMEM
    out_ref,        # (seq, bb, output_dim)     VMEM
    xproj_scratch,  # (seq, bb, 4*hidden)       VMEM scratch
    decay_scratch,  # (seq, bb, 1)              VMEM scratch
    h_all_scratch,  # (seq, bb, hidden)         VMEM scratch
):
    seq, bb, input_dim = inputs_ref.shape
    hidden = wh_ref.shape[0]
    out_dim = wl_ref.shape[1]

    # ---- hoisted, vectorized pre-work (off the serial recurrence path) ------
    decay_scratch[...] = 1.0 / jnp.log(jnp.e + deltas_ref[...])

    x_flat = inputs_ref[...].reshape(seq * bb, input_dim)
    xproj_scratch[...] = (
        jnp.dot(x_flat, wx_ref[...], preferred_element_type=jnp.float32)
        + b_ref[...]
    ).reshape(seq, bb, 4 * hidden)

    # ---- sequential T-LSTM recurrence (h, c carried in registers) -----------
    def step(t, carry):
        h_prev, c_prev = carry

        # single fused gate matmul: (bb, hidden) @ (hidden, 4*hidden)
        gates = xproj_scratch[t] + jnp.dot(
            h_prev, wh_ref[...], preferred_element_type=jnp.float32
        )
        i_g = jax.nn.sigmoid(gates[:, 0 * hidden:1 * hidden])
        f_g = jax.nn.sigmoid(gates[:, 1 * hidden:2 * hidden])
        o_g = jax.nn.sigmoid(gates[:, 2 * hidden:3 * hidden])
        g_g = jnp.tanh(gates[:, 3 * hidden:4 * hidden])

        # T-LSTM time-aware cell adjustment
        c_short = jnp.tanh(
            jnp.dot(c_prev, wd_ref[...], preferred_element_type=jnp.float32)
            + bd_ref[...]
        )
        c_adj = (c_prev - c_short) + c_short * decay_scratch[t]

        c_new = f_g * c_adj + i_g * g_g
        h_new = o_g * jnp.tanh(c_new)

        h_all_scratch[t] = h_new
        return (h_new, c_new)

    h0 = jnp.zeros((bb, hidden), jnp.float32)
    c0 = jnp.zeros((bb, hidden), jnp.float32)
    unroll = True if seq <= 16 else 4
    lax.fori_loop(0, seq, step, (h0, c0), unroll=unroll)

    # ---- hoisted Linear + Sigmoid head, single dense store ------------------
    h_flat = h_all_scratch[...].reshape(seq * bb, hidden)
    logits = (
        jnp.dot(h_flat, wl_ref[...], preferred_element_type=jnp.float32)
        + bl_ref[...]
    )
    out_ref[...] = jax.nn.sigmoid(logits).reshape(seq, bb, out_dim)


def mask_discriminator_forward(inputs, time_deltas, params):
    """inputs: (bs, seq, input_dim) f32; time_deltas: (bs, seq, 1) f32."""
    bs, seq, input_dim = inputs.shape
    hidden = params["wd"].shape[0]
    output_dim = params["wl"].shape[1]

    # Time-major for free leading-axis per-step indexing inside the kernel.
    inputs_t = jnp.transpose(inputs, (1, 0, 2))        # (seq, bs, input_dim)
    deltas_t = jnp.transpose(time_deltas, (1, 0, 2))   # (seq, bs, 1)

    # Batch tile: fill sublanes when possible, otherwise take the whole batch.
    bb = 8 if bs % 8 == 0 else bs
    grid = (bs // bb,)

    def batch_map(i):
        return (0, i, 0)

    def const2_map(i):
        return (0, 0)

    out_t = pl.pallas_call(
        _mask_disc_kernel,
        out_shape=jax.ShapeDtypeStruct((seq, bs, output_dim), jnp.float32),
        grid=grid,
        in_specs=[
            pl.BlockSpec((seq, bb, input_dim), batch_map),
            pl.BlockSpec((seq, bb, 1), batch_map),
            pl.BlockSpec((input_dim, 4 * hidden), const2_map),
            pl.BlockSpec((hidden, 4 * hidden), const2_map),
            pl.BlockSpec((1, 4 * hidden), const2_map),
            pl.BlockSpec((hidden, hidden), const2_map),
            pl.BlockSpec((1, hidden), const2_map),
            pl.BlockSpec((hidden, output_dim), const2_map),
            pl.BlockSpec((1, output_dim), const2_map),
        ],
        out_specs=pl.BlockSpec((seq, bb, output_dim), batch_map),
        scratch_shapes=[
            pltpu.VMEM((seq, bb, 4 * hidden), jnp.float32),
            pltpu.VMEM((seq, bb, 1), jnp.float32),
            pltpu.VMEM((seq, bb, hidden), jnp.float32),
        ],
        compiler_params=pltpu.CompilerParams(
            dimension_semantics=("parallel",),
        ),
    )(
        inputs_t,
        deltas_t,
        params["wx"],
        params["wh"],
        params["b"],
        params["wd"],
        params["bd"],
        params["wl"],
        params["bl"],
    )
    return jnp.transpose(out_t, (1, 0, 2))             # (bs, seq, output_dim)


def init_params(key, input_dim, hidden_dim, output_dim):
    ks = jax.random.split(key, 7)
    scale = 0.1
    return {
        # Fused gate weights: lane axis is [i | f | o | g] blocks of size hidden.
        "wx": scale * jax.random.normal(ks[0], (input_dim, 4 * hidden_dim), jnp.float32),
        "wh": scale * jax.random.normal(ks[1], (hidden_dim, 4 * hidden_dim), jnp.float32),
        "b": scale * jax.random.normal(ks[2], (1, 4 * hidden_dim), jnp.float32),
        "wd": scale * jax.random.normal(ks[3], (hidden_dim, hidden_dim), jnp.float32),
        "bd": scale * jax.random.normal(ks[4], (1, hidden_dim), jnp.float32),
        "wl": scale * jax.random.normal(ks[5], (hidden_dim, output_dim), jnp.float32),
        "bl": scale * jax.random.normal(ks[6], (1, output_dim), jnp.float32),
    }


if __name__ == "__main__":
    key = jax.random.PRNGKey(0)
    k_in, k_dt, k_p = jax.random.split(key, 3)

    bs, seq, input_dim, hidden_dim, output_dim = 2, 8, 4, 32, 1

    inputs = jax.random.normal(k_in, (bs, seq, input_dim), jnp.float32)
    time_deltas = jax.random.uniform(
        k_dt, (bs, seq, 1), jnp.float32, minval=0.1, maxval=2.0
    )
    params = init_params(k_p, input_dim, hidden_dim, output_dim)

    out = mask_discriminator_forward(inputs, time_deltas, params)
    out = jax.block_until_ready(out)

    assert out.shape == (bs, seq, output_dim)
    assert bool(jnp.all(jnp.isfinite(out)))
    assert bool(jnp.all((out >= 0.0) & (out <= 1.0)))
    print("KERNEL_OK")
</pallas_src>

<mosaic_0001>
module attributes {stable_mosaic.version = 11 : i64} {
  func.func @_mask_disc_kernel(%arg0: i32, %arg1: memref<8x2x4xf32, #tpu.memory_space<vmem>>, %arg2: memref<8x2x1xf32, #tpu.memory_space<vmem>>, %arg3: memref<4x128xf32, #tpu.memory_space<vmem>>, %arg4: memref<32x128xf32, #tpu.memory_space<vmem>>, %arg5: memref<1x128xf32, #tpu.memory_space<vmem>>, %arg6: memref<32x32xf32, #tpu.memory_space<vmem>>, %arg7: memref<1x32xf32, #tpu.memory_space<vmem>>, %arg8: memref<32x1xf32, #tpu.memory_space<vmem>>, %arg9: memref<1x1xf32, #tpu.memory_space<vmem>>, %arg10: memref<8x2x1xf32, #tpu.memory_space<vmem>>, %arg11: memref<8x2x128xf32, #tpu.memory_space<vmem>>, %arg12: memref<8x2x1xf32, #tpu.memory_space<vmem>>, %arg13: memref<8x2x32xf32, #tpu.memory_space<vmem>>) attributes {dimension_semantics = [#tpu.dimension_semantics<parallel>], iteration_bounds = array<i64: 1>, scalar_prefetch = 0 : i64, scratch_operands = 3 : i64, tpu.core_type = #tpu.core_type<tc>, window_params = [{transform_indices = @transform_0, window_bounds = array<i64: 8, 2, 4>}, {transform_indices = @transform_1, window_bounds = array<i64: 8, 2, 1>}, {pipeline_mode = #tpu.pipeline_mode<synchronous>, transform_indices = @transform_2, window_bounds = array<i64: 4, 128>}, {pipeline_mode = #tpu.pipeline_mode<synchronous>, transform_indices = @transform_3, window_bounds = array<i64: 32, 128>}, {pipeline_mode = #tpu.pipeline_mode<synchronous>, transform_indices = @transform_4, window_bounds = array<i64: 1, 128>}, {pipeline_mode = #tpu.pipeline_mode<synchronous>, transform_indices = @transform_5, window_bounds = array<i64: 32, 32>}, {pipeline_mode = #tpu.pipeline_mode<synchronous>, transform_indices = @transform_6, window_bounds = array<i64: 1, 32>}, {pipeline_mode = #tpu.pipeline_mode<synchronous>, transform_indices = @transform_7, window_bounds = array<i64: 32, 1>}, {pipeline_mode = #tpu.pipeline_mode<synchronous>, transform_indices = @transform_8, window_bounds = array<i64: 1, 1>}, {transform_indices = @transform_9, window_bounds = array<i64: 8, 2, 1>}]} {
    %c0 = arith.constant 0 : index
    %c0_0 = arith.constant 0 : index
    %c0_1 = arith.constant 0 : index
    %0 = vector.load %arg2[%c0, %c0_0, %c0_1] : memref<8x2x1xf32, #tpu.memory_space<vmem>>, vector<8x2x1xf32>
    %cst = arith.constant 2.71828175 : f32
    %1 = vector.broadcast %cst : f32 to vector<8x2x1xf32>
    %2 = arith.addf %1, %0 : vector<8x2x1xf32>
    %3 = math.log %2 : vector<8x2x1xf32>
    %cst_2 = arith.constant 1.000000e+00 : f32
    %4 = vector.broadcast %cst_2 : f32 to vector<8x2x1xf32>
    %5 = arith.divf %4, %3 : vector<8x2x1xf32>
    %c0_3 = arith.constant 0 : index
    %c0_4 = arith.constant 0 : index
    %c0_5 = arith.constant 0 : index
    %6 = vector.load %arg12[%c0_3, %c0_4, %c0_5] : memref<8x2x1xf32, #tpu.memory_space<vmem>>, vector<8x2x1xf32>
    tpu.vector_store %arg12[%c0_3, %c0_4, %c0_5], %5 {strides = array<i32>} : memref<8x2x1xf32, #tpu.memory_space<vmem>>, vector<8x2x1xf32>,
    %c0_6 = arith.constant 0 : index
    %c0_7 = arith.constant 0 : index
    %c0_8 = arith.constant 0 : index
    %7 = vector.load %arg1[%c0_6, %c0_7, %c0_8] : memref<8x2x4xf32, #tpu.memory_space<vmem>>, vector<8x2x4xf32>
    %8 = vector.shape_cast %7 : vector<8x2x4xf32> to vector<16x4xf32>
    %c0_9 = arith.constant 0 : index
    %c0_10 = arith.constant 0 : index
    %9 = vector.load %arg3[%c0_9, %c0_10] : memref<4x128xf32, #tpu.memory_space<vmem>>, vector<4x128xf32>
    %cst_11 = arith.constant dense<0.000000e+00> : vector<16x128xf32>
    %10 = tpu.matmul %8, %9, %cst_11 {dimension_numbers = #tpu.dot_dimension_numbers<[1], [0], [0], [1], [0, 0, 1, 1], [], []>} : vector<16x4xf32>, vector<4x128xf32>, vector<16x128xf32> -> vector<16x128xf32>
    %c0_12 = arith.constant 0 : index
    %c0_13 = arith.constant 0 : index
    %11 = vector.load %arg5[%c0_12, %c0_13] : memref<1x128xf32, #tpu.memory_space<vmem>>, vector<1x128xf32>
    %12 = vector.broadcast %11 : vector<1x128xf32> to vector<16x128xf32>
    %13 = arith.addf %10, %12 : vector<16x128xf32>
    %14 = vector.shape_cast %13 : vector<16x128xf32> to vector<8x2x128xf32>
    %c0_14 = arith.constant 0 : index
    %c0_15 = arith.constant 0 : index
    %c0_16 = arith.constant 0 : index
    %15 = vector.load %arg11[%c0_14, %c0_15, %c0_16] : memref<8x2x128xf32, #tpu.memory_space<vmem>>, vector<8x2x128xf32>
    tpu.vector_store %arg11[%c0_14, %c0_15, %c0_16], %14 {strides = array<i32>} : memref<8x2x128xf32, #tpu.memory_space<vmem>>, vector<8x2x128xf32>,
    %cst_17 = arith.constant 0.000000e+00 : f32
    %16 = vector.broadcast %cst_17 : f32 to vector<2x32xf32>
    %cst_18 = arith.constant 0.000000e+00 : f32
    %17 = vector.broadcast %cst_18 : f32 to vector<2x32xf32>
    %c0_i32 = arith.constant 0 : i32
    %18 = arith.index_cast %c0_i32 : i32 to index
    %c0_19 = arith.constant 0 : index
    %c0_20 = arith.constant 0 : index
    %19 = vector.load %arg11[%18, %c0_19, %c0_20] : memref<8x2x128xf32, #tpu.memory_space<vmem>>, vector<1x2x128xf32>
    %20 = vector.shape_cast %19 : vector<1x2x128xf32> to vector<2x128xf32>
    %c0_21 = arith.constant 0 : index
    %c0_22 = arith.constant 0 : index
    %21 = vector.load %arg4[%c0_21, %c0_22] : memref<32x128xf32, #tpu.memory_space<vmem>>, vector<32x128xf32>
    %cst_23 = arith.constant dense<0.000000e+00> : vector<2x128xf32>
    %22 = tpu.matmul %16, %21, %cst_23 {dimension_numbers = #tpu.dot_dimension_numbers<[1], [0], [0], [1], [0, 0, 1, 1], [], []>} : vector<2x32xf32>, vector<32x128xf32>, vector<2x128xf32> -> vector<2x128xf32>
    %23 = arith.addf %20, %22 : vector<2x128xf32>
    %24 = vector.extract_strided_slice %23 {offsets = [0, 0], sizes = [2, 32], strides = [1, 1]} : vector<2x128xf32> to vector<2x32xf32>
    %25 = arith.negf %24 : vector<2x32xf32>
    %26 = math.exp %25 : vector<2x32xf32>
    %cst_24 = arith.constant 1.000000e+00 : f32
    %27 = vector.broadcast %cst_24 : f32 to vector<2x32xf32>
    %28 = arith.addf %27, %26 : vector<2x32xf32>
    %29 = arith.divf %27, %28 : vector<2x32xf32>
    %30 = vector.extract_strided_slice %23 {offsets = [0, 32], sizes = [2, 32], strides = [1, 1]} : vector<2x128xf32> to vector<2x32xf32>
    %31 = arith.negf %30 : vector<2x32xf32>
    %32 = math.exp %31 : vector<2x32xf32>
    %cst_25 = arith.constant 1.000000e+00 : f32
    %33 = vector.broadcast %cst_25 : f32 to vector<2x32xf32>
    %34 = arith.addf %33, %32 : vector<2x32xf32>
    %35 = arith.divf %33, %34 : vector<2x32xf32>
    %36 = vector.extract_strided_slice %23 {offsets = [0, 64], sizes = [2, 32], strides = [1, 1]} : vector<2x128xf32> to vector<2x32xf32>
    %37 = arith.negf %36 : vector<2x32xf32>
    %38 = math.exp %37 : vector<2x32xf32>
    %cst_26 = arith.constant 1.000000e+00 : f32
    %39 = vector.broadcast %cst_26 : f32 to vector<2x32xf32>
    %40 = arith.addf %39, %38 : vector<2x32xf32>
    %41 = arith.divf %39, %40 : vector<2x32xf32>
    %42 = vector.extract_strided_slice %23 {offsets = [0, 96], sizes = [2, 32], strides = [1, 1]} : vector<2x128xf32> to vector<2x32xf32>
    %43 = math.tanh %42 : vector<2x32xf32>
    %c0_27 = arith.constant 0 : index
    %c0_28 = arith.constant 0 : index
    %44 = vector.load %arg6[%c0_27, %c0_28] : memref<32x32xf32, #tpu.memory_space<vmem>>, vector<32x32xf32>
    %cst_29 = arith.constant dense<0.000000e+00> : vector<2x32xf32>
    %45 = tpu.matmul %17, %44, %cst_29 {dimension_numbers = #tpu.dot_dimension_numbers<[1], [0], [0], [1], [0, 0, 1, 1], [], []>} : vector<2x32xf32>, vector<32x32xf32>, vector<2x32xf32> -> vector<2x32xf32>
    %c0_30 = arith.constant 0 : index
    %c0_31 = arith.constant 0 : index
    %46 = vector.load %arg7[%c0_30, %c0_31] : memref<1x32xf32, #tpu.memory_space<vmem>>, vector<1x32xf32>
    %47 = vector.broadcast %46 : vector<1x32xf32> to vector<2x32xf32>
    %48 = arith.addf %45, %47 : vector<2x32xf32>
    %49 = math.tanh %48 : vector<2x32xf32>
    %50 = arith.subf %17, %49 : vector<2x32xf32>
    %51 = arith.index_cast %c0_i32 : i32 to index
    %c0_32 = arith.constant 0 : index
    %c0_33 = arith.constant 0 : index
    %52 = vector.load %arg12[%51, %c0_32, %c0_33] : memref<8x2x1xf32, #tpu.memory_space<vmem>>, vector<1x2x1xf32>
    %53 = vector.shape_cast %52 : vector<1x2x1xf32> to vector<2x1xf32>
    %54 = vector.broadcast %53 : vector<2x1xf32> to vector<2x32xf32>
    %55 = arith.mulf %49, %54 : vector<2x32xf32>
    %56 = arith.addf %50, %55 : vector<2x32xf32>
    %57 = arith.mulf %35, %56 : vector<2x32xf32>
    %58 = arith.mulf %29, %43 : vector<2x32xf32>
    %59 = arith.addf %57, %58 : vector<2x32xf32>
    %60 = math.tanh %59 : vector<2x32xf32>
    %61 = arith.mulf %41, %60 : vector<2x32xf32>
    %62 = arith.index_cast %c0_i32 : i32 to index
    %c0_34 = arith.constant 0 : index
    %c0_35 = arith.constant 0 : index
    %63 = vector.load %arg13[%62, %c0_34, %c0_35] : memref<8x2x32xf32, #tpu.memory_space<vmem>>, vector<1x2x32xf32>
    %64 = vector.shape_cast %63 : vector<1x2x32xf32> to vector<2x32xf32>
    %65 = vector.shape_cast %61 : vector<2x32xf32> to vector<1x2x32xf32>
    tpu.vector_store %arg13[%62, %c0_34, %c0_35], %65 {strides = array<i32>} : memref<8x2x32xf32, #tpu.memory_space<vmem>>, vector<1x2x32xf32>,
    %c1_i32 = arith.constant 1 : i32
    %66 = arith.index_cast %c1_i32 : i32 to index
    %c0_36 = arith.constant 0 : index
    %c0_37 = arith.constant 0 : index
    %67 = vector.load %arg11[%66, %c0_36, %c0_37] : memref<8x2x128xf32, #tpu.memory_space<vmem>>, vector<1x2x128xf32>
    %68 = vector.shape_cast %67 : vector<1x2x128xf32> to vector<2x128xf32>
    %c0_38 = arith.constant 0 : index
    %c0_39 = arith.constant 0 : index
    %69 = vector.load %arg4[%c0_38, %c0_39] : memref<32x128xf32, #tpu.memory_space<vmem>>, vector<32x128xf32>
    %cst_40 = arith.constant dense<0.000000e+00> : vector<2x128xf32>
    %70 = tpu.matmul %61, %69, %cst_40 {dimension_numbers = #tpu.dot_dimension_numbers<[1], [0], [0], [1], [0, 0, 1, 1], [], []>} : vector<2x32xf32>, vector<32x128xf32>, vector<2x128xf32> -> vector<2x128xf32>
    %71 = arith.addf %68, %70 : vector<2x128xf32>
    %72 = vector.extract_strided_slice %71 {offsets = [0, 0], sizes = [2, 32], strides = [1, 1]} : vector<2x128xf32> to vector<2x32xf32>
    %73 = arith.negf %72 : vector<2x32xf32>
    %74 = math.exp %73 : vector<2x32xf32>
    %cst_41 = arith.constant 1.000000e+00 : f32
    %75 = vector.broadcast %cst_41 : f32 to vector<2x32xf32>
    %76 = arith.addf %75, %74 : vector<2x32xf32>
    %77 = arith.divf %75, %76 : vector<2x32xf32>
    %78 = vector.extract_strided_slice %71 {offsets = [0, 32], sizes = [2, 32], strides = [1, 1]} : vector<2x128xf32> to vector<2x32xf32>
    %79 = arith.negf %78 : vector<2x32xf32>
    %80 = math.exp %79 : vector<2x32xf32>
    %cst_42 = arith.constant 1.000000e+00 : f32
    %81 = vector.broadcast %cst_42 : f32 to vector<2x32xf32>
    %82 = arith.addf %81, %80 : vector<2x32xf32>
    %83 = arith.divf %81, %82 : vector<2x32xf32>
    %84 = vector.extract_strided_slice %71 {offsets = [0, 64], sizes = [2, 32], strides = [1, 1]} : vector<2x128xf32> to vector<2x32xf32>
    %85 = arith.negf %84 : vector<2x32xf32>
    %86 = math.exp %85 : vector<2x32xf32>
    %cst_43 = arith.constant 1.000000e+00 : f32
    %87 = vector.broadcast %cst_43 : f32 to vector<2x32xf32>
    %88 = arith.addf %87, %86 : vector<2x32xf32>
    %89 = arith.divf %87, %88 : vector<2x32xf32>
    %90 = vector.extract_strided_slice %71 {offsets = [0, 96], sizes = [2, 32], strides = [1, 1]} : vector<2x128xf32> to vector<2x32xf32>
    %91 = math.tanh %90 : vector<2x32xf32>
    %c0_44 = arith.constant 0 : index
    %c0_45 = arith.constant 0 : index
    %92 = vector.load %arg6[%c0_44, %c0_45] : memref<32x32xf32, #tpu.memory_space<vmem>>, vector<32x32xf32>
    %cst_46 = arith.constant dense<0.000000e+00> : vector<2x32xf32>
    %93 = tpu.matmul %59, %92, %cst_46 {dimension_numbers = #tpu.dot_dimension_numbers<[1], [0], [0], [1], [0, 0, 1, 1], [], []>} : vector<2x32xf32>, vector<32x32xf32>, vector<2x32xf32> -> vector<2x32xf32>
    %c0_47 = arith.constant 0 : index
    %c0_48 = arith.constant 0 : index
    %94 = vector.load %arg7[%c0_47, %c0_48] : memref<1x32xf32, #tpu.memory_space<vmem>>, vector<1x32xf32>
    %95 = vector.broadcast %94 : vector<1x32xf32> to vector<2x32xf32>
    %96 = arith.addf %93, %95 : vector<2x32xf32>
    %97 = math.tanh %96 : vector<2x32xf32>
    %98 = arith.subf %59, %97 : vector<2x32xf32>
    %99 = arith.index_cast %c1_i32 : i32 to index
    %c0_49 = arith.constant 0 : index
    %c0_50 = arith.constant 0 : index
    %100 = vector.load %arg12[%99, %c0_49, %c0_50] : memref<8x2x1xf32, #tpu.memory_space<vmem>>, vector<1x2x1xf32>
    %101 = vector.shape_cast %100 : vector<1x2x1xf32> to vector<2x1xf32>
    %102 = vector.broadcast %101 : vector<2x1xf32> to vector<2x32xf32>
    %103 = arith.mulf %97, %102 : vector<2x32xf32>
    %104 = arith.addf %98, %103 : vector<2x32xf32>
    %105 = arith.mulf %83, %104 : vector<2x32xf32>
    %106 = arith.mulf %77, %91 : vector<2x32xf32>
    %107 = arith.addf %105, %106 : vector<2x32xf32>
    %108 = math.tanh %107 : vector<2x32xf32>
    %109 = arith.mulf %89, %108 : vector<2x32xf32>
    %110 = arith.index_cast %c1_i32 : i32 to index
    %c0_51 = arith.constant 0 : index
    %c0_52 = arith.constant 0 : index
    %111 = vector.load %arg13[%110, %c0_51, %c0_52] : memref<8x2x32xf32, #tpu.memory_space<vmem>>, vector<1x2x32xf32>
    %112 = vector.shape_cast %111 : vector<1x2x32xf32> to vector<2x32xf32>
    %113 = vector.shape_cast %109 : vector<2x32xf32> to vector<1x2x32xf32>
    tpu.vector_store %arg13[%110, %c0_51, %c0_52], %113 {strides = array<i32>} : memref<8x2x32xf32, #tpu.memory_space<vmem>>, vector<1x2x32xf32>,
    %c2_i32 = arith.constant 2 : i32
    %114 = arith.index_cast %c2_i32 : i32 to index
    %c0_53 = arith.constant 0 : index
    %c0_54 = arith.constant 0 : index
    %115 = vector.load %arg11[%114, %c0_53, %c0_54] : memref<8x2x128xf32, #tpu.memory_space<vmem>>, vector<1x2x128xf32>
    %116 = vector.shape_cast %115 : vector<1x2x128xf32> to vector<2x128xf32>
    %c0_55 = arith.constant 0 : index
    %c0_56 = arith.constant 0 : index
    %117 = vector.load %arg4[%c0_55, %c0_56] : memref<32x128xf32, #tpu.memory_space<vmem>>, vector<32x128xf32>
    %cst_57 = arith.constant dense<0.000000e+00> : vector<2x128xf32>
    %118 = tpu.matmul %109, %117, %cst_57 {dimension_numbers = #tpu.dot_dimension_numbers<[1], [0], [0], [1], [0, 0, 1, 1], [], []>} : vector<2x32xf32>, vector<32x128xf32>, vector<2x128xf32> -> vector<2x128xf32>
    %119 = arith.addf %116, %118 : vector<2x128xf32>
    %120 = vector.extract_strided_slice %119 {offsets = [0, 0], sizes = [2, 32], strides = [1, 1]} : vector<2x128xf32> to vector<2x32xf32>
    %121 = arith.negf %120 : vector<2x32xf32>
    %122 = math.exp %121 : vector<2x32xf32>
    %cst_58 = arith.constant 1.000000e+00 : f32
    %123 = vector.broadcast %cst_58 : f32 to vector<2x32xf32>
    %124 = arith.addf %123, %122 : vector<2x32xf32>
    %125 = arith.divf %123, %124 : vector<2x32xf32>
    %126 = vector.extract_strided_slice %119 {offsets = [0, 32], sizes = [2, 32], strides = [1, 1]} : vector<2x128xf32> to vector<2x32xf32>
    %127 = arith.negf %126 : vector<2x32xf32>
    %128 = math.exp %127 : vector<2x32xf32>
    %cst_59 = arith.constant 1.000000e+00 : f32
    %129 = vector.broadcast %cst_59 : f32 to vector<2x32xf32>
    %130 = arith.addf %129, %128 : vector<2x32xf32>
    %131 = arith.divf %129, %130 : vector<2x32xf32>
    %132 = vector.extract_strided_slice %119 {offsets = [0, 64], sizes = [2, 32], strides = [1, 1]} : vector<2x128xf32> to vector<2x32xf32>
    %133 = arith.negf %132 : vector<2x32xf32>
    %134 = math.exp %133 : vector<2x32xf32>
    %cst_60 = arith.constant 1.000000e+00 : f32
    %135 = vector.broadcast %cst_60 : f32 to vector<2x32xf32>
    %136 = arith.addf %135, %134 : vector<2x32xf32>
    %137 = arith.divf %135, %136 : vector<2x32xf32>
    %138 = vector.extract_strided_slice %119 {offsets = [0, 96], sizes = [2, 32], strides = [1, 1]} : vector<2x128xf32> to vector<2x32xf32>
    %139 = math.tanh %138 : vector<2x32xf32>
    %c0_61 = arith.constant 0 : index
    %c0_62 = arith.constant 0 : index
    %140 = vector.load %arg6[%c0_61, %c0_62] : memref<32x32xf32, #tpu.memory_space<vmem>>, vector<32x32xf32>
    %cst_63 = arith.constant dense<0.000000e+00> : vector<2x32xf32>
    %141 = tpu.matmul %107, %140, %cst_63 {dimension_numbers = #tpu.dot_dimension_numbers<[1], [0], [0], [1], [0, 0, 1, 1], [], []>} : vector<2x32xf32>, vector<32x32xf32>, vector<2x32xf32> -> vector<2x32xf32>
    %c0_64 = arith.constant 0 : index
    %c0_65 = arith.constant 0 : index
    %142 = vector.load %arg7[%c0_64, %c0_65] : memref<1x32xf32, #tpu.memory_space<vmem>>, vector<1x32xf32>
    %143 = vector.broadcast %142 : vector<1x32xf32> to vector<2x32xf32>
    %144 = arith.addf %141, %143 : vector<2x32xf32>
    %145 = math.tanh %144 : vector<2x32xf32>
    %146 = arith.subf %107, %145 : vector<2x32xf32>
    %147 = arith.index_cast %c2_i32 : i32 to index
    %c0_66 = arith.constant 0 : index
    %c0_67 = arith.constant 0 : index
    %148 = vector.load %arg12[%147, %c0_66, %c0_67] : memref<8x2x1xf32, #tpu.memory_space<vmem>>, vector<1x2x1xf32>
    %149 = vector.shape_cast %148 : vector<1x2x1xf32> to vector<2x1xf32>
    %150 = vector.broadcast %149 : vector<2x1xf32> to vector<2x32xf32>
    %151 = arith.mulf %145, %150 : vector<2x32xf32>
    %152 = arith.addf %146, %151 : vector<2x32xf32>
    %153 = arith.mulf %131, %152 : vector<2x32xf32>
    %154 = arith.mulf %125, %139 : vector<2x32xf32>
    %155 = arith.addf %153, %154 : vector<2x32xf32>
    %156 = math.tanh %155 : vector<2x32xf32>
    %157 = arith.mulf %137, %156 : vector<2x32xf32>
    %158 = arith.index_cast %c2_i32 : i32 to index
    %c0_68 = arith.constant 0 : index
    %c0_69 = arith.constant 0 : index
    %159 = vector.load %arg13[%158, %c0_68, %c0_69] : memref<8x2x32xf32, #tpu.memory_space<vmem>>, vector<1x2x32xf32>
    %160 = vector.shape_cast %159 : vector<1x2x32xf32> to vector<2x32xf32>
    %161 = vector.shape_cast %157 : vector<2x32xf32> to vector<1x2x32xf32>
    tpu.vector_store %arg13[%158, %c0_68, %c0_69], %161 {strides = array<i32>} : memref<8x2x32xf32, #tpu.memory_space<vmem>>, vector<1x2x32xf32>,
    %c3_i32 = arith.constant 3 : i32
    %162 = arith.index_cast %c3_i32 : i32 to index
    %c0_70 = arith.constant 0 : index
    %c0_71 = arith.constant 0 : index
    %163 = vector.load %arg11[%162, %c0_70, %c0_71] : memref<8x2x128xf32, #tpu.memory_space<vmem>>, vector<1x2x128xf32>
    %164 = vector.shape_cast %163 : vector<1x2x128xf32> to vector<2x128xf32>
    %c0_72 = arith.constant 0 : index
    %c0_73 = arith.constant 0 : index
    %165 = vector.load %arg4[%c0_72, %c0_73] : memref<32x128xf32, #tpu.memory_space<vmem>>, vector<32x128xf32>
    %cst_74 = arith.constant dense<0.000000e+00> : vector<2x128xf32>
    %166 = tpu.matmul %157, %165, %cst_74 {dimension_numbers = #tpu.dot_dimension_numbers<[1], [0], [0], [1], [0, 0, 1, 1], [], []>} : vector<2x32xf32>, vector<32x128xf32>, vector<2x128xf32> -> vector<2x128xf32>
    %167 = arith.addf %164, %166 : vector<2x128xf32>
    %168 = vector.extract_strided_slice %167 {offsets = [0, 0], sizes = [2, 32], strides = [1, 1]} : vector<2x128xf32> to vector<2x32xf32>
    %169 = arith.negf %168 : vector<2x32xf32>
    %170 = math.exp %169 : vector<2x32xf32>
    %cst_75 = arith.constant 1.000000e+00 : f32
    %171 = vector.broadcast %cst_75 : f32 to vector<2x32xf32>
    %172 = arith.addf %171, %170 : vector<2x32xf32>
    %173 = arith.divf %171, %172 : vector<2x32xf32>
    %174 = vector.extract_strided_slice %167 {offsets = [0, 32], sizes = [2, 32], strides = [1, 1]} : vector<2x128xf32> to vector<2x32xf32>
    %175 = arith.negf %174 : vector<2x32xf32>
    %176 = math.exp %175 : vector<2x32xf32>
    %cst_76 = arith.constant 1.000000e+00 : f32
    %177 = vector.broadcast %cst_76 : f32 to vector<2x32xf32>
    %178 = arith.addf %177, %176 : vector<2x32xf32>
    %179 = arith.divf %177, %178 : vector<2x32xf32>
    %180 = vector.extract_strided_slice %167 {offsets = [0, 64], sizes = [2, 32], strides = [1, 1]} : vector<2x128xf32> to vector<2x32xf32>
    %181 = arith.negf %180 : vector<2x32xf32>
    %182 = math.exp %181 : vector<2x32xf32>
    %cst_77 = arith.constant 1.000000e+00 : f32
    %183 = vector.broadcast %cst_77 : f32 to vector<2x32xf32>
    %184 = arith.addf %183, %182 : vector<2x32xf32>
    %185 = arith.divf %183, %184 : vector<2x32xf32>
    %186 = vector.extract_strided_slice %167 {offsets = [0, 96], sizes = [2, 32], strides = [1, 1]} : vector<2x128xf32> to vector<2x32xf32>
    %187 = math.tanh %186 : vector<2x32xf32>
    %c0_78 = arith.constant 0 : index
    %c0_79 = arith.constant 0 : index
    %188 = vector.load %arg6[%c0_78, %c0_79] : memref<32x32xf32, #tpu.memory_space<vmem>>, vector<32x32xf32>
    %cst_80 = arith.constant dense<0.000000e+00> : vector<2x32xf32>
    %189 = tpu.matmul %155, %188, %cst_80 {dimension_numbers = #tpu.dot_dimension_numbers<[1], [0], [0], [1], [0, 0, 1, 1], [], []>} : vector<2x32xf32>, vector<32x32xf32>, vector<2x32xf32> -> vector<2x32xf32>
    %c0_81 = arith.constant 0 : index
    %c0_82 = arith.constant 0 : index
    %190 = vector.load %arg7[%c0_81, %c0_82] : memref<1x32xf32, #tpu.memory_space<vmem>>, vector<1x32xf32>
    %191 = vector.broadcast %190 : vector<1x32xf32> to vector<2x32xf32>
    %192 = arith.addf %189, %191 : vector<2x32xf32>
    %193 = math.tanh %192 : vector<2x32xf32>
    %194 = arith.subf %155, %193 : vector<2x32xf32>
    %195 = arith.index_cast %c3_i32 : i32 to index
    %c0_83 = arith.constant 0 : index
    %c0_84 = arith.constant 0 : index
    %196 = vector.load %arg12[%195, %c0_83, %c0_84] : memref<8x2x1xf32, #tpu.memory_space<vmem>>, vector<1x2x1xf32>
    %197 = vector.shape_cast %196 : vector<1x2x1xf32> to vector<2x1xf32>
    %198 = vector.broadcast %197 : vector<2x1xf32> to vector<2x32xf32>
    %199 = arith.mulf %193, %198 : vector<2x32xf32>
    %200 = arith.addf %194, %199 : vector<2x32xf32>
    %201 = arith.mulf %179, %200 : vector<2x32xf32>
    %202 = arith.mulf %173, %187 : vector<2x32xf32>
    %203 = arith.addf %201, %202 : vector<2x32xf32>
    %204 = math.tanh %203 : vector<2x32xf32>
    %205 = arith.mulf %185, %204 : vector<2x32xf32>
    %206 = arith.index_cast %c3_i32 : i32 to index
    %c0_85 = arith.constant 0 : index
    %c0_86 = arith.constant 0 : index
    %207 = vector.load %arg13[%206, %c0_85, %c0_86] : memref<8x2x32xf32, #tpu.memory_space<vmem>>, vector<1x2x32xf32>
    %208 = vector.shape_cast %207 : vector<1x2x32xf32> to vector<2x32xf32>
    %209 = vector.shape_cast %205 : vector<2x32xf32> to vector<1x2x32xf32>
    tpu.vector_store %arg13[%206, %c0_85, %c0_86], %209 {strides = array<i32>} : memref<8x2x32xf32, #tpu.memory_space<vmem>>, vector<1x2x32xf32>,
    %c4_i32 = arith.constant 4 : i32
    %210 = arith.index_cast %c4_i32 : i32 to index
    %c0_87 = arith.constant 0 : index
    %c0_88 = arith.constant 0 : index
    %211 = vector.load %arg11[%210, %c0_87, %c0_88] : memref<8x2x128xf32, #tpu.memory_space<vmem>>, vector<1x2x128xf32>
    %212 = vector.shape_cast %211 : vector<1x2x128xf32> to vector<2x128xf32>
    %c0_89 = arith.constant 0 : index
    %c0_90 = arith.constant 0 : index
    %213 = vector.load %arg4[%c0_89, %c0_90] : memref<32x128xf32, #tpu.memory_space<vmem>>, vector<32x128xf32>
    %cst_91 = arith.constant dense<0.000000e+00> : vector<2x128xf32>
    %214 = tpu.matmul %205, %213, %cst_91 {dimension_numbers = #tpu.dot_dimension_numbers<[1], [0], [0], [1], [0, 0, 1, 1], [], []>} : vector<2x32xf32>, vector<32x128xf32>, vector<2x128xf32> -> vector<2x128xf32>
    %215 = arith.addf %212, %214 : vector<2x128xf32>
    %216 = vector.extract_strided_slice %215 {offsets = [0, 0], sizes = [2, 32], strides = [1, 1]} : vector<2x128xf32> to vector<2x32xf32>
    %217 = arith.negf %216 : vector<2x32xf32>
    %218 = math.exp %217 : vector<2x32xf32>
    %cst_92 = arith.constant 1.000000e+00 : f32
    %219 = vector.broadcast %cst_92 : f32 to vector<2x32xf32>
    %220 = arith.addf %219, %218 : vector<2x32xf32>
    %221 = arith.divf %219, %220 : vector<2x32xf32>
    %222 = vector.extract_strided_slice %215 {offsets = [0, 32], sizes = [2, 32], strides = [1, 1]} : vector<2x128xf32> to vector<2x32xf32>
    %223 = arith.negf %222 : vector<2x32xf32>
    %224 = math.exp %223 : vector<2x32xf32>
    %cst_93 = arith.constant 1.000000e+00 : f32
    %225 = vector.broadcast %cst_93 : f32 to vector<2x32xf32>
    %226 = arith.addf %225, %224 : vector<2x32xf32>
    %227 = arith.divf %225, %226 : vector<2x32xf32>
    %228 = vector.extract_strided_slice %215 {offsets = [0, 64], sizes = [2, 32], strides = [1, 1]} : vector<2x128xf32> to vector<2x32xf32>
    %229 = arith.negf %228 : vector<2x32xf32>
    %230 = math.exp %229 : vector<2x32xf32>
    %cst_94 = arith.constant 1.000000e+00 : f32
    %231 = vector.broadcast %cst_94 : f32 to vector<2x32xf32>
    %232 = arith.addf %231, %230 : vector<2x32xf32>
    %233 = arith.divf %231, %232 : vector<2x32xf32>
    %234 = vector.extract_strided_slice %215 {offsets = [0, 96], sizes = [2, 32], strides = [1, 1]} : vector<2x128xf32> to vector<2x32xf32>
    %235 = math.tanh %234 : vector<2x32xf32>
    %c0_95 = arith.constant 0 : index
    %c0_96 = arith.constant 0 : index
    %236 = vector.load %arg6[%c0_95, %c0_96] : memref<32x32xf32, #tpu.memory_space<vmem>>, vector<32x32xf32>
    %cst_97 = arith.constant dense<0.000000e+00> : vector<2x32xf32>
    %237 = tpu.matmul %203, %236, %cst_97 {dimension_numbers = #tpu.dot_dimension_numbers<[1], [0], [0], [1], [0, 0, 1, 1], [], []>} : vector<2x32xf32>, vector<32x32xf32>, vector<2x32xf32> -> vector<2x32xf32>
    %c0_98 = arith.constant 0 : index
    %c0_99 = arith.constant 0 : index
    %238 = vector.load %arg7[%c0_98, %c0_99] : memref<1x32xf32, #tpu.memory_space<vmem>>, vector<1x32xf32>
    %239 = vector.broadcast %238 : vector<1x32xf32> to vector<2x32xf32>
    %240 = arith.addf %237, %239 : vector<2x32xf32>
    %241 = math.tanh %240 : vector<2x32xf32>
    %242 = arith.subf %203, %241 : vector<2x32xf32>
    %243 = arith.index_cast %c4_i32 : i32 to index
    %c0_100 = arith.constant 0 : index
    %c0_101 = arith.constant 0 : index
    %244 = vector.load %arg12[%243, %c0_100, %c0_101] : memref<8x2x1xf32, #tpu.memory_space<vmem>>, vector<1x2x1xf32>
    %245 = vector.shape_cast %244 : vector<1x2x1xf32> to vector<2x1xf32>
    %246 = vector.broadcast %245 : vector<2x1xf32> to vector<2x32xf32>
    %247 = arith.mulf %241, %246 : vector<2x32xf32>
    %248 = arith.addf %242, %247 : vector<2x32xf32>
    %249 = arith.mulf %227, %248 : vector<2x32xf32>
    %250 = arith.mulf %221, %235 : vector<2x32xf32>
    %251 = arith.addf %249, %250 : vector<2x32xf32>
    %252 = math.tanh %251 : vector<2x32xf32>
    %253 = arith.mulf %233, %252 : vector<2x32xf32>
    %254 = arith.index_cast %c4_i32 : i32 to index
    %c0_102 = arith.constant 0 : index
    %c0_103 = arith.constant 0 : index
    %255 = vector.load %arg13[%254, %c0_102, %c0_103] : memref<8x2x32xf32, #tpu.memory_space<vmem>>, vector<1x2x32xf32>
    %256 = vector.shape_cast %255 : vector<1x2x32xf32> to vector<2x32xf32>
    %257 = vector.shape_cast %253 : vector<2x32xf32> to vector<1x2x32xf32>
    tpu.vector_store %arg13[%254, %c0_102, %c0_103], %257 {strides = array<i32>} : memref<8x2x32xf32, #tpu.memory_space<vmem>>, vector<1x2x32xf32>,
    %c5_i32 = arith.constant 5 : i32
    %258 = arith.index_cast %c5_i32 : i32 to index
    %c0_104 = arith.constant 0 : index
    %c0_105 = arith.constant 0 : index
    %259 = vector.load %arg11[%258, %c0_104, %c0_105] : memref<8x2x128xf32, #tpu.memory_space<vmem>>, vector<1x2x128xf32>
    %260 = vector.shape_cast %259 : vector<1x2x128xf32> to vector<2x128xf32>
    %c0_106 = arith.constant 0 : index
    %c0_107 = arith.constant 0 : index
    %261 = vector.load %arg4[%c0_106, %c0_107] : memref<32x128xf32, #tpu.memory_space<vmem>>, vector<32x128xf32>
    %cst_108 = arith.constant dense<0.000000e+00> : vector<2x128xf32>
    %262 = tpu.matmul %253, %261, %cst_108 {dimension_numbers = #tpu.dot_dimension_numbers<[1], [0], [0], [1], [0, 0, 1, 1], [], []>} : vector<2x32xf32>, vector<32x128xf32>, vector<2x128xf32> -> vector<2x128xf32>
    %263 = arith.addf %260, %262 : vector<2x128xf32>
    %264 = vector.extract_strided_slice %263 {offsets = [0, 0], sizes = [2, 32], strides = [1, 1]} : vector<2x128xf32> to vector<2x32xf32>
    %265 = arith.negf %264 : vector<2x32xf32>
    %266 = math.exp %265 : vector<2x32xf32>
    %cst_109 = arith.constant 1.000000e+00 : f32
    %267 = vector.broadcast %cst_109 : f32 to vector<2x32xf32>
    %268 = arith.addf %267, %266 : vector<2x32xf32>
    %269 = arith.divf %267, %268 : vector<2x32xf32>
    %270 = vector.extract_strided_slice %263 {offsets = [0, 32], sizes = [2, 32], strides = [1, 1]} : vector<2x128xf32> to vector<2x32xf32>
    %271 = arith.negf %270 : vector<2x32xf32>
    %272 = math.exp %271 : vector<2x32xf32>
    %cst_110 = arith.constant 1.000000e+00 : f32
    %273 = vector.broadcast %cst_110 : f32 to vector<2x32xf32>
    %274 = arith.addf %273, %272 : vector<2x32xf32>
    %275 = arith.divf %273, %274 : vector<2x32xf32>
    %276 = vector.extract_strided_slice %263 {offsets = [0, 64], sizes = [2, 32], strides = [1, 1]} : vector<2x128xf32> to vector<2x32xf32>
    %277 = arith.negf %276 : vector<2x32xf32>
    %278 = math.exp %277 : vector<2x32xf32>
    %cst_111 = arith.constant 1.000000e+00 : f32
    %279 = vector.broadcast %cst_111 : f32 to vector<2x32xf32>
    %280 = arith.addf %279, %278 : vector<2x32xf32>
    %281 = arith.divf %279, %280 : vector<2x32xf32>
    %282 = vector.extract_strided_slice %263 {offsets = [0, 96], sizes = [2, 32], strides = [1, 1]} : vector<2x128xf32> to vector<2x32xf32>
    %283 = math.tanh %282 : vector<2x32xf32>
    %c0_112 = arith.constant 0 : index
    %c0_113 = arith.constant 0 : index
    %284 = vector.load %arg6[%c0_112, %c0_113] : memref<32x32xf32, #tpu.memory_space<vmem>>, vector<32x32xf32>
    %cst_114 = arith.constant dense<0.000000e+00> : vector<2x32xf32>
    %285 = tpu.matmul %251, %284, %cst_114 {dimension_numbers = #tpu.dot_dimension_numbers<[1], [0], [0], [1], [0, 0, 1, 1], [], []>} : vector<2x32xf32>, vector<32x32xf32>, vector<2x32xf32> -> vector<2x32xf32>
    %c0_115 = arith.constant 0 : index
    %c0_116 = arith.constant 0 : index
    %286 = vector.load %arg7[%c0_115, %c0_116] : memref<1x32xf32, #tpu.memory_space<vmem>>, vector<1x32xf32>
    %287 = vector.broadcast %286 : vector<1x32xf32> to vector<2x32xf32>
    %288 = arith.addf %285, %287 : vector<2x32xf32>
    %289 = math.tanh %288 : vector<2x32xf32>
    %290 = arith.subf %251, %289 : vector<2x32xf32>
    %291 = arith.index_cast %c5_i32 : i32 to index
    %c0_117 = arith.constant 0 : index
    %c0_118 = arith.constant 0 : index
    %292 = vector.load %arg12[%291, %c0_117, %c0_118] : memref<8x2x1xf32, #tpu.memory_space<vmem>>, vector<1x2x1xf32>
    %293 = vector.shape_cast %292 : vector<1x2x1xf32> to vector<2x1xf32>
    %294 = vector.broadcast %293 : vector<2x1xf32> to vector<2x32xf32>
    %295 = arith.mulf %289, %294 : vector<2x32xf32>
    %296 = arith.addf %290, %295 : vector<2x32xf32>
    %297 = arith.mulf %275, %296 : vector<2x32xf32>
    %298 = arith.mulf %269, %283 : vector<2x32xf32>
    %299 = arith.addf %297, %298 : vector<2x32xf32>
    %300 = math.tanh %299 : vector<2x32xf32>
    %301 = arith.mulf %281, %300 : vector<2x32xf32>
    %302 = arith.index_cast %c5_i32 : i32 to index
    %c0_119 = arith.constant 0 : index
    %c0_120 = arith.constant 0 : index
    %303 = vector.load %arg13[%302, %c0_119, %c0_120] : memref<8x2x32xf32, #tpu.memory_space<vmem>>, vector<1x2x32xf32>
    %304 = vector.shape_cast %303 : vector<1x2x32xf32> to vector<2x32xf32>
    %305 = vector.shape_cast %301 : vector<2x32xf32> to vector<1x2x32xf32>
    tpu.vector_store %arg13[%302, %c0_119, %c0_120], %305 {strides = array<i32>} : memref<8x2x32xf32, #tpu.memory_space<vmem>>, vector<1x2x32xf32>,
    %c6_i32 = arith.constant 6 : i32
    %306 = arith.index_cast %c6_i32 : i32 to index
    %c0_121 = arith.constant 0 : index
    %c0_122 = arith.constant 0 : index
    %307 = vector.load %arg11[%306, %c0_121, %c0_122] : memref<8x2x128xf32, #tpu.memory_space<vmem>>, vector<1x2x128xf32>
    %308 = vector.shape_cast %307 : vector<1x2x128xf32> to vector<2x128xf32>
    %c0_123 = arith.constant 0 : index
    %c0_124 = arith.constant 0 : index
    %309 = vector.load %arg4[%c0_123, %c0_124] : memref<32x128xf32, #tpu.memory_space<vmem>>, vector<32x128xf32>
    %cst_125 = arith.constant dense<0.000000e+00> : vector<2x128xf32>
    %310 = tpu.matmul %301, %309, %cst_125 {dimension_numbers = #tpu.dot_dimension_numbers<[1], [0], [0], [1], [0, 0, 1, 1], [], []>} : vector<2x32xf32>, vector<32x128xf32>, vector<2x128xf32> -> vector<2x128xf32>
    %311 = arith.addf %308, %310 : vector<2x128xf32>
    %312 = vector.extract_strided_slice %311 {offsets = [0, 0], sizes = [2, 32], strides = [1, 1]} : vector<2x128xf32> to vector<2x32xf32>
    %313 = arith.negf %312 : vector<2x32xf32>
    %314 = math.exp %313 : vector<2x32xf32>
    %cst_126 = arith.constant 1.000000e+00 : f32
    %315 = vector.broadcast %cst_126 : f32 to vector<2x32xf32>
    %316 = arith.addf %315, %314 : vector<2x32xf32>
    %317 = arith.divf %315, %316 : vector<2x32xf32>
    %318 = vector.extract_strided_slice %311 {offsets = [0, 32], sizes = [2, 32], strides = [1, 1]} : vector<2x128xf32> to vector<2x32xf32>
    %319 = arith.negf %318 : vector<2x32xf32>
    %320 = math.exp %319 : vector<2x32xf32>
    %cst_127 = arith.constant 1.000000e+00 : f32
    %321 = vector.broadcast %cst_127 : f32 to vector<2x32xf32>
    %322 = arith.addf %321, %320 : vector<2x32xf32>
    %323 = arith.divf %321, %322 : vector<2x32xf32>
    %324 = vector.extract_strided_slice %311 {offsets = [0, 64], sizes = [2, 32], strides = [1, 1]} : vector<2x128xf32> to vector<2x32xf32>
    %325 = arith.negf %324 : vector<2x32xf32>
    %326 = math.exp %325 : vector<2x32xf32>
    %cst_128 = arith.constant 1.000000e+00 : f32
    %327 = vector.broadcast %cst_128 : f32 to vector<2x32xf32>
    %328 = arith.addf %327, %326 : vector<2x32xf32>
    %329 = arith.divf %327, %328 : vector<2x32xf32>
    %330 = vector.extract_strided_slice %311 {offsets = [0, 96], sizes = [2, 32], strides = [1, 1]} : vector<2x128xf32> to vector<2x32xf32>
    %331 = math.tanh %330 : vector<2x32xf32>
    %c0_129 = arith.constant 0 : index
    %c0_130 = arith.constant 0 : index
    %332 = vector.load %arg6[%c0_129, %c0_130] : memref<32x32xf32, #tpu.memory_space<vmem>>, vector<32x32xf32>
    %cst_131 = arith.constant dense<0.000000e+00> : vector<2x32xf32>
    %333 = tpu.matmul %299, %332, %cst_131 {dimension_numbers = #tpu.dot_dimension_numbers<[1], [0], [0], [1], [0, 0, 1, 1], [], []>} : vector<2x32xf32>, vector<32x32xf32>, vector<2x32xf32> -> vector<2x32xf32>
    %c0_132 = arith.constant 0 : index
    %c0_133 = arith.constant 0 : index
    %334 = vector.load %arg7[%c0_132, %c0_133] : memref<1x32xf32, #tpu.memory_space<vmem>>, vector<1x32xf32>
    %335 = vector.broadcast %334 : vector<1x32xf32> to vector<2x32xf32>
    %336 = arith.addf %333, %335 : vector<2x32xf32>
    %337 = math.tanh %336 : vector<2x32xf32>
    %338 = arith.subf %299, %337 : vector<2x32xf32>
    %339 = arith.index_cast %c6_i32 : i32 to index
    %c0_134 = arith.constant 0 : index
    %c0_135 = arith.constant 0 : index
    %340 = vector.load %arg12[%339, %c0_134, %c0_135] : memref<8x2x1xf32, #tpu.memory_space<vmem>>, vector<1x2x1xf32>
    %341 = vector.shape_cast %340 : vector<1x2x1xf32> to vector<2x1xf32>
    %342 = vector.broadcast %341 : vector<2x1xf32> to vector<2x32xf32>
    %343 = arith.mulf %337, %342 : vector<2x32xf32>
    %344 = arith.addf %338, %343 : vector<2x32xf32>
    %345 = arith.mulf %323, %344 : vector<2x32xf32>
    %346 = arith.mulf %317, %331 : vector<2x32xf32>
    %347 = arith.addf %345, %346 : vector<2x32xf32>
    %348 = math.tanh %347 : vector<2x32xf32>
    %349 = arith.mulf %329, %348 : vector<2x32xf32>
    %350 = arith.index_cast %c6_i32 : i32 to index
    %c0_136 = arith.constant 0 : index
    %c0_137 = arith.constant 0 : index
    %351 = vector.load %arg13[%350, %c0_136, %c0_137] : memref<8x2x32xf32, #tpu.memory_space<vmem>>, vector<1x2x32xf32>
    %352 = vector.shape_cast %351 : vector<1x2x32xf32> to vector<2x32xf32>
    %353 = vector.shape_cast %349 : vector<2x32xf32> to vector<1x2x32xf32>
    tpu.vector_store %arg13[%350, %c0_136, %c0_137], %353 {strides = array<i32>} : memref<8x2x32xf32, #tpu.memory_space<vmem>>, vector<1x2x32xf32>,
    %c7_i32 = arith.constant 7 : i32
    %354 = arith.index_cast %c7_i32 : i32 to index
    %c0_138 = arith.constant 0 : index
    %c0_139 = arith.constant 0 : index
    %355 = vector.load %arg11[%354, %c0_138, %c0_139] : memref<8x2x128xf32, #tpu.memory_space<vmem>>, vector<1x2x128xf32>
    %356 = vector.shape_cast %355 : vector<1x2x128xf32> to vector<2x128xf32>
    %c0_140 = arith.constant 0 : index
    %c0_141 = arith.constant 0 : index
    %357 = vector.load %arg4[%c0_140, %c0_141] : memref<32x128xf32, #tpu.memory_space<vmem>>, vector<32x128xf32>
    %cst_142 = arith.constant dense<0.000000e+00> : vector<2x128xf32>
    %358 = tpu.matmul %349, %357, %cst_142 {dimension_numbers = #tpu.dot_dimension_numbers<[1], [0], [0], [1], [0, 0, 1, 1], [], []>} : vector<2x32xf32>, vector<32x128xf32>, vector<2x128xf32> -> vector<2x128xf32>
    %359 = arith.addf %356, %358 : vector<2x128xf32>
    %360 = vector.extract_strided_slice %359 {offsets = [0, 0], sizes = [2, 32], strides = [1, 1]} : vector<2x128xf32> to vector<2x32xf32>
    %361 = arith.negf %360 : vector<2x32xf32>
    %362 = math.exp %361 : vector<2x32xf32>
    %cst_143 = arith.constant 1.000000e+00 : f32
    %363 = vector.broadcast %cst_143 : f32 to vector<2x32xf32>
    %364 = arith.addf %363, %362 : vector<2x32xf32>
    %365 = arith.divf %363, %364 : vector<2x32xf32>
    %366 = vector.extract_strided_slice %359 {offsets = [0, 32], sizes = [2, 32], strides = [1, 1]} : vector<2x128xf32> to vector<2x32xf32>
    %367 = arith.negf %366 : vector<2x32xf32>
    %368 = math.exp %367 : vector<2x32xf32>
    %cst_144 = arith.constant 1.000000e+00 : f32
    %369 = vector.broadcast %cst_144 : f32 to vector<2x32xf32>
    %370 = arith.addf %369, %368 : vector<2x32xf32>
    %371 = arith.divf %369, %370 : vector<2x32xf32>
    %372 = vector.extract_strided_slice %359 {offsets = [0, 64], sizes = [2, 32], strides = [1, 1]} : vector<2x128xf32> to vector<2x32xf32>
    %373 = arith.negf %372 : vector<2x32xf32>
    %374 = math.exp %373 : vector<2x32xf32>
    %cst_145 = arith.constant 1.000000e+00 : f32
    %375 = vector.broadcast %cst_145 : f32 to vector<2x32xf32>
    %376 = arith.addf %375, %374 : vector<2x32xf32>
    %377 = arith.divf %375, %376 : vector<2x32xf32>
    %378 = vector.extract_strided_slice %359 {offsets = [0, 96], sizes = [2, 32], strides = [1, 1]} : vector<2x128xf32> to vector<2x32xf32>
    %379 = math.tanh %378 : vector<2x32xf32>
    %c0_146 = arith.constant 0 : index
    %c0_147 = arith.constant 0 : index
    %380 = vector.load %arg6[%c0_146, %c0_147] : memref<32x32xf32, #tpu.memory_space<vmem>>, vector<32x32xf32>
    %cst_148 = arith.constant dense<0.000000e+00> : vector<2x32xf32>
    %381 = tpu.matmul %347, %380, %cst_148 {dimension_numbers = #tpu.dot_dimension_numbers<[1], [0], [0], [1], [0, 0, 1, 1], [], []>} : vector<2x32xf32>, vector<32x32xf32>, vector<2x32xf32> -> vector<2x32xf32>
    %c0_149 = arith.constant 0 : index
    %c0_150 = arith.constant 0 : index
    %382 = vector.load %arg7[%c0_149, %c0_150] : memref<1x32xf32, #tpu.memory_space<vmem>>, vector<1x32xf32>
    %383 = vector.broadcast %382 : vector<1x32xf32> to vector<2x32xf32>
    %384 = arith.addf %381, %383 : vector<2x32xf32>
    %385 = math.tanh %384 : vector<2x32xf32>
    %386 = arith.subf %347, %385 : vector<2x32xf32>
    %387 = arith.index_cast %c7_i32 : i32 to index
    %c0_151 = arith.constant 0 : index
    %c0_152 = arith.constant 0 : index
    %388 = vector.load %arg12[%387, %c0_151, %c0_152] : memref<8x2x1xf32, #tpu.memory_space<vmem>>, vector<1x2x1xf32>
    %389 = vector.shape_cast %388 : vector<1x2x1xf32> to vector<2x1xf32>
    %390 = vector.broadcast %389 : vector<2x1xf32> to vector<2x32xf32>
    %391 = arith.mulf %385, %390 : vector<2x32xf32>
    %392 = arith.addf %386, %391 : vector<2x32xf32>
    %393 = arith.mulf %371, %392 : vector<2x32xf32>
    %394 = arith.mulf %365, %379 : vector<2x32xf32>
    %395 = arith.addf %393, %394 : vector<2x32xf32>
    %396 = math.tanh %395 : vector<2x32xf32>
    %397 = arith.mulf %377, %396 : vector<2x32xf32>
    %398 = arith.index_cast %c7_i32 : i32 to index
    %c0_153 = arith.constant 0 : index
    %c0_154 = arith.constant 0 : index
    %399 = vector.load %arg13[%398, %c0_153, %c0_154] : memref<8x2x32xf32, #tpu.memory_space<vmem>>, vector<1x2x32xf32>
    %400 = vector.shape_cast %399 : vector<1x2x32xf32> to vector<2x32xf32>
    %401 = vector.shape_cast %397 : vector<2x32xf32> to vector<1x2x32xf32>
    tpu.vector_store %arg13[%398, %c0_153, %c0_154], %401 {strides = array<i32>} : memref<8x2x32xf32, #tpu.memory_space<vmem>>, vector<1x2x32xf32>,
    %c8_i32 = arith.constant 8 : i32
    %c0_155 = arith.constant 0 : index
    %c0_156 = arith.constant 0 : index
    %c0_157 = arith.constant 0 : index
    %402 = vector.load %arg13[%c0_155, %c0_156, %c0_157] : memref<8x2x32xf32, #tpu.memory_space<vmem>>, vector<8x2x32xf32>
    %403 = vector.shape_cast %402 : vector<8x2x32xf32> to vector<16x32xf32>
    %c0_158 = arith.constant 0 : index
    %c0_159 = arith.constant 0 : index
    %404 = vector.load %arg8[%c0_158, %c0_159] : memref<32x1xf32, #tpu.memory_space<vmem>>, vector<32x1xf32>
    %cst_160 = arith.constant dense<0.000000e+00> : vector<16x1xf32>
    %405 = tpu.matmul %403, %404, %cst_160 {dimension_numbers = #tpu.dot_dimension_numbers<[1], [0], [0], [1], [0, 0, 1, 1], [], []>} : vector<16x32xf32>, vector<32x1xf32>, vector<16x1xf32> -> vector<16x1xf32>
    %c0_161 = arith.constant 0 : index
    %c0_162 = arith.constant 0 : index
    %406 = vector.load %arg9[%c0_161, %c0_162] : memref<1x1xf32, #tpu.memory_space<vmem>>, vector<1x1xf32>
    %407 = vector.broadcast %406 : vector<1x1xf32> to vector<16x1xf32>
    %408 = arith.addf %405, %407 : vector<16x1xf32>
    %409 = arith.negf %408 : vector<16x1xf32>
    %410 = math.exp %409 : vector<16x1xf32>
    %cst_163 = arith.constant 1.000000e+00 : f32
    %411 = vector.broadcast %cst_163 : f32 to vector<16x1xf32>
    %412 = arith.addf %411, %410 : vector<16x1xf32>
    %413 = arith.divf %411, %412 : vector<16x1xf32>
    %414 = vector.shape_cast %413 : vector<16x1xf32> to vector<8x2x1xf32>
    %c0_164 = arith.constant 0 : index
    %c0_165 = arith.constant 0 : index
    %c0_166 = arith.constant 0 : index
    %415 = vector.load %arg10[%c0_164, %c0_165, %c0_166] : memref<8x2x1xf32, #tpu.memory_space<vmem>>, vector<8x2x1xf32>
    tpu.vector_store %arg10[%c0_164, %c0_165, %c0_166], %414 {strides = array<i32>} : memref<8x2x1xf32, #tpu.memory_space<vmem>>, vector<8x2x1xf32>,
    return
  }
  func.func @transform_0(%arg0: i32) -> (i32, i32, i32) {
    %c0_i32 = arith.constant 0 : i32
    %c0_i32_0 = arith.constant 0 : i32
    %c0_i32_1 = arith.constant 0 : i32
    return %c0_i32, %arg0, %c0_i32_0 : i32, i32, i32
  }
  func.func @transform_1(%arg0: i32) -> (i32, i32, i32) {
    %c0_i32 = arith.constant 0 : i32
    %c0_i32_0 = arith.constant 0 : i32
    %c0_i32_1 = arith.constant 0 : i32
    return %c0_i32, %arg0, %c0_i32_0 : i32, i32, i32
  }
  func.func @transform_2(%arg0: i32) -> (i32, i32) {
    %c0_i32 = arith.constant 0 : i32
    %c0_i32_0 = arith.constant 0 : i32
    %c0_i32_1 = arith.constant 0 : i32
    return %c0_i32, %c0_i32_0 : i32, i32
  }
  func.func @transform_3(%arg0: i32) -> (i32, i32) {
    %c0_i32 = arith.constant 0 : i32
    %c0_i32_0 = arith.constant 0 : i32
    %c0_i32_1 = arith.constant 0 : i32
    return %c0_i32, %c0_i32_0 : i32, i32
  }
  func.func @transform_4(%arg0: i32) -> (i32, i32) {
    %c0_i32 = arith.constant 0 : i32
    %c0_i32_0 = arith.constant 0 : i32
    %c0_i32_1 = arith.constant 0 : i32
    return %c0_i32, %c0_i32_0 : i32, i32
  }
  func.func @transform_5(%arg0: i32) -> (i32, i32) {
    %c0_i32 = arith.constant 0 : i32
    %c0_i32_0 = arith.constant 0 : i32
    %c0_i32_1 = arith.constant 0 : i32
    return %c0_i32, %c0_i32_0 : i32, i32
  }
  func.func @transform_6(%arg0: i32) -> (i32, i32) {
    %c0_i32 = arith.constant 0 : i32
    %c0_i32_0 = arith.constant 0 : i32
    %c0_i32_1 = arith.constant 0 : i32
    return %c0_i32, %c0_i32_0 : i32, i32
  }
  func.func @transform_7(%arg0: i32) -> (i32, i32) {
    %c0_i32 = arith.constant 0 : i32
    %c0_i32_0 = arith.constant 0 : i32
    %c0_i32_1 = arith.constant 0 : i32
    return %c0_i32, %c0_i32_0 : i32, i32
  }
  func.func @transform_8(%arg0: i32) -> (i32, i32) {
    %c0_i32 = arith.constant 0 : i32
    %c0_i32_0 = arith.constant 0 : i32
    %c0_i32_1 = arith.constant 0 : i32
    return %c0_i32, %c0_i32_0 : i32, i32
  }
  func.func @transform_9(%arg0: i32) -> (i32, i32, i32) {
    %c0_i32 = arith.constant 0 : i32
    %c0_i32_0 = arith.constant 0 : i32
    %c0_i32_1 = arith.constant 0 : i32
    return %c0_i32, %arg0, %c0_i32_0 : i32, i32, i32
  }
}

</mosaic_0001>

<bundles_post_ra>
// kernel: tpu_custom_call.1
= control target key start
LH: loop header
LB: loop body
LE: loop exit
PB: predicated region body
PF: predicated region fallthrough
CT: control target
= control target key end

     0   :  { %vm238_vm0 = vcmask 1043456   ;;  %v1569_v3 = vmov 0   ;;  %v1570_v16 = vmov 0.0   ;;  %vm233_vm1 = vcmask 31744   ;;  %s1572_s19 = smov 96   ;;  %s1573_s21 = smov 64   ;;  %s1947_s5 = inlined_call_operand.vmem [shape: f32[32,32], index: 5, kind: input, shape index: {}]   ;;  %s1948_s2 = inlined_call_operand.vmem [shape: f32[4,128], index: 2, kind: input, shape index: {}]   ;;  %s1949_s0 = inlined_call_operand.vmem [shape: f32[8,2,4], index: 0, kind: input, shape index: {}]   ;;  %s1950_s3 = inlined_call_operand.vmem [shape: f32[32,128], index: 3, kind: input, shape index: {}]   ;;  %s1951_s1 = inlined_call_operand.vmem [shape: f32[8,2,1], index: 1, kind: input, shape index: {}]   ;;  %s1952_s4 = inlined_call_operand.vmem [shape: f32[1,128], index: 4, kind: input, shape index: {}]   ;;  %s1953_s6 = inlined_call_operand.vmem [shape: f32[1,32], index: 6, kind: input, shape index: {}]   ;;  %s1954_s7 = inlined_call_operand.vmem [shape: f32[32,1], index: 7, kind: input, shape index: {}]   ;;  %s1955_s8 = inlined_call_operand.<no memory space> [shape: f32[1,1], index: 8, kind: input, shape index: {}]   ;;  %s1956_s9 = inlined_call_operand.vmem [shape: f32[8,2,1], index: 9, kind: output, shape index: {}]  }
   0x1   :  { %v1627_v0 = vld [vmem:[%s1947_s5 + $0x18] sm:$0xff]  ;;  %v1632_v1 = vld [vmem:[%s1947_s5 + $0x10] sm:$0xff]  ;;  %v203_v2 = vld [vmem:[%s1948_s2] sm:$0xf]  ;;  %1436 = vset.pattern.permute.xlu0 %v1569_v3  ;;  %1437 = vset.pattern.permute.xlu1 %v1569_v3  ;;  %vm186_vm6 = vcmask 1024   ;;  %vm292_vm15 = vcmask 261120  }
   0x2   :  { %357 = vmatpush.msra.mxu3 %v1627_v0  ;;  %1402 = vmatpush.msk.msra.mxu0 %vm238_vm0, %v203_v2  ;;  %v1641_v4 = vld [vmem:[%s1947_s5 + $0x8] sm:$0xff]  ;;  %v195_v5 = vld [vmem:[%s1949_s0] sm:$0x3]  ;;  %v196_v6 = vld [vmem:[%s1949_s0 + $0x2] sm:$0x3]  ;;  %vm400_vm0 = vcmask 254976  }
   0x3   :  { %v197_v7 = vld [vmem:[%s1949_s0 + $0x4] sm:$0x3]  ;;  %v198_v8 = vld [vmem:[%s1949_s0 + $0x6] sm:$0x3]  ;;  %216 = vst [vmem:[#allocation1] ss:$4 sm:$0xff] %v195_v5  ;;  %1438 = vset.pattern.permute.xlu2 %v1569_v3 }
   0x4   :  { %358 = vmatpush.msra.mxu3 %v1632_v1  ;;  %218 = vst [vmem:[#allocation1 + $0x1] ss:$4 sm:$0xff] %v196_v6  ;;  %v291_v9 = vld [vmem:[%s1950_s3 + $0x18] sm:$0xff]  ;;  %v290_v10 = vld [vmem:[%s1950_s3 + $0x10] sm:$0xff]  ;;  %v1665_v11 = vld [vmem:[%s1947_s5] sm:$0xff] }
   0x5   :  { %220 = vst [vmem:[#allocation1 + $0x2] ss:$4 sm:$0xff] %v197_v7  ;;  %308 = vmatpush.msra.mxu1 %v291_v9  ;;  %v289_v12 = vld [vmem:[%s1950_s3 + $0x8] sm:$0xff]  ;;  %v34_v13 = vld [vmem:[%s1951_s1] sm:$0x3]  ;;  %546 = vmatpush.msra.mxu2 %v291_v9 }
   0x6   :  { %359 = vmatpush.msra.mxu3 %v1641_v4  ;;  %222 = vst [vmem:[#allocation1 + $0x3] ss:$4 sm:$0xff] %v198_v8  ;;  %v42_v14 = vadd.f32 2.7182817, %v34_v13  ;;  %670 = vmatpush.msrb.mxu0 %v291_v9  ;;  %v288_v15 = vld [vmem:[%s1950_s3] sm:$0xff] }
   0x7   :  { %309 = vmatpush.msra.mxu1 %v290_v10  ;;  %547 = vmatpush.msra.mxu2 %v290_v10  ;;  %v1695_v31 = vld [vmem:[%s1952_s4] ss:$0 sm:$0xff]  ;;  %s1571_s4 = smov 32   ;;  %v35_v8 = vld [vmem:[%s1951_s1 + $0x2] sm:$0x3] }
   0x8   :  { %360 = vmatpush.msra.mxu3 %v1665_v11  ;;  %1449 = vlog2.f32 %v42_v14  ;;  %671 = vmatpush.msrb.mxu0 %v290_v10  ;;  %v1440_v32 = vld [vmem:[%s1953_s6] ss:$0 sm:$0xff] }
   0x9   :  { %361 = vmatmul.f32.vlgmr.msra.gmra.mxu3 %v1570_v16  ;;  %310 = vmatpush.msra.mxu1 %v289_v12 }
   0xa   :  { %422 = vmatpush.msrb.mxu3 %v291_v9  ;;  %548 = vmatpush.msra.mxu2 %v289_v12 }
   0xb   :  { %311 = vmatpush.msra.mxu1 %v288_v15  ;;  %672 = vmatpush.msrb.mxu0 %v289_v12 }
   0xc   :  { %312 = vmatmul.f32.vlgmr.msra.gmra.mxu1 %v1570_v16  ;;  %423 = vmatpush.msrb.mxu3 %v290_v10 }
   0xd   :  { %v231_v17 = vld.sshfl [vmem:[#allocation1] sm:$0xff pattern:$0x73625140]  ;;  %476 = vmatpush.msrb.mxu1 %v1627_v0  ;;  %549 = vmatpush.msra.mxu2 %v288_v15 }
   0xe   :  { %v1450_v18 = vpop.eup %1449  ;;  %1403 = vmatmul.msk.f32.vlgmr.msra.gmra.mxu0 %vm233_vm1, %v231_v17  ;;  %424 = vmatpush.msrb.mxu3 %v289_v12 }
   0xf   :  { %v51_v19 = vmul.f32 0.6931472, %v1450_v18  ;;  %477 = vmatpush.msrb.mxu1 %v1632_v1  ;;  %673 = vmatpush.msrb.mxu0 %v288_v15 }
  0x10   :  { %425 = vmatpush.msrb.mxu3 %v288_v15  ;;  %794 = vmatpush.msrb.mxu2 %v291_v9  ;;  %v43_v9 = vadd.f32 2.7182817, %v35_v8 }
  0x11   :  { %1451 = vrcp.f32 %v51_v19  ;;  %478 = vmatpush.msrb.mxu1 %v1641_v4  ;;  %v77_v22 = vand.u32 2147483648, %v51_v19  ;;  %vm71_vm2 = vweird.f32 %v51_v19  ;;  %v75_v24 = vand.u32 2147483647, %v51_v19 }
  0x12   :  { %600 = vmatpush.msra.mxu3 %v1627_v0  ;;  %795 = vmatpush.msrb.mxu2 %v290_v10 }
  0x13   :  { %479 = vmatpush.msrb.mxu1 %v1665_v11  ;;  %v78_v26 = vor.u32 1.1754944e-38, %v77_v22  ;;  %vm76_vm5 = vcmp.eq.f32.partialorder %v75_v24, 8.507059e+37 }
  0x14   :  { %601 = vmatpush.msra.mxu3 %v1632_v1  ;;  %796 = vmatpush.msrb.mxu2 %v289_v12 }
  0x15   :  { %724 = vmatpush.msra.mxu1 %v1627_v0 }
  0x16   :  { %602 = vmatpush.msra.mxu3 %v1641_v4  ;;  %797 = vmatpush.msrb.mxu2 %v288_v15 }
  0x17   :  { %725 = vmatpush.msra.mxu1 %v1632_v1  ;;  %v1452_v20 = vpop.eup %1451 }
  0x18   :  { %603 = vmatpush.msra.mxu3 %v1665_v11  ;;  %v67_v21 = vmul.f32 %v1452_v20, %v51_v19  ;;  %vm72_vm3 = vweird.f32 %v1452_v20 }
  0x19   :  { %726 = vmatpush.msra.mxu1 %v1641_v4  ;;  %vm73_vm4 = vmor %vm71_vm2, %vm72_vm3 }
  0x1a   :  { %v68_v23 = vsub.f32 1.0, %v67_v21 }
  0x1b   :  { %727 = vmatpush.msra.mxu1 %v1665_v11 }
  0x1c   :  { %v69_v25 = vmul.f32 %v1452_v20, %v68_v23 }
  0x1e   :  { %v70_v27 = vadd.f32 %v1452_v20, %v69_v25 }
  0x20   :  { %v74_v28 = vsel %vm73_vm4, %v1452_v20, %v70_v27 }
  0x21   :  { %v79_v29 = vsel %vm76_vm5, %v78_v26, %v74_v28 }
  0x22   :  { %187 = vst.msk [vmem:[#allocation3] sm:$0x3] %vm186_vm6, %v79_v29  ;;  %v1441_v29 = vld [vmem:[%s1953_s6] ss:$0 sm:$0xff] }
  0x29   :  { %v367_v30 = vld [vmem:[#allocation3] sm:$0x3] }
  0x2a   :  { %370 = vperm.xlu0 %1436, %v367_v30  }
  0x89   :  { %v313_v40 = vpop.f32.mrf.mxu1 }
  0x8b   :  { %v259_v33 = vpop.f32.mrf.mxu0 }
  0x8c   :  { %v260_v34 = vadd.f32 %v1695_v31, %v259_v33  ;;  %v362_v35 = vpop.f32.mrf.mxu3 }
  0x8d   :  { %v363_v39 = vadd.f32 %v1440_v32, %v362_v35 }
  0x8e   :  { %v267_v36 = vrot.slane %v260_v34, 2  ;;  %v268_v37 = vrot.slane %v260_v34, 4  ;;  %v269_v38 = vrot.slane %v260_v34, 6  ;;  %279 = vst [vmem:[#allocation2] sm:$0x3] %v260_v34 }
  0x8f   :  { %1453 = vtanh.f32 %v363_v39 }
  0x90   :  { %280 = vst [vmem:[#allocation2 + $0x2] sm:$0x3] %v267_v36 }
  0x91   :  { %281 = vst [vmem:[#allocation2 + $0x4] sm:$0x3] %v268_v37 }
  0x92   :  { %282 = vst [vmem:[#allocation2 + $0x6] sm:$0x3] %v269_v38 }
  0x95   :  { %v287_v41 = vld [vmem:[#allocation2] sm:$0x3]  ;;  %v1454_v43 = vpop.eup %1453 }
  0x96   :  { %v316_v42 = vadd.f32 %v313_v40, %v287_v41  ;;  %v366_v44 = vsub.f32 0.0, %v1454_v43 }
  0x98   :  { %1455 = vtanh.f32 %v316_v42  ;;  %v1405_v49 = vmul.f32 -1.442695, %v316_v42 }
  0x9a   :  { %1457 = vpow2.f32 %v1405_v49 }
  0x9c   :  { %v371_v45 = vpop.permute.xlu0 %370 }
  0x9d   :  { %v373_v46 = vmul.f32 %v1454_v43, %v371_v45 }
  0x9e   :  { %v1456_v47 = vpop.eup %1455 }
  0x9f   :  { %381 = vrot.lane.b32.xlu0 %v1456_v47, %s1571_s4  ;;  %v374_v48 = vadd.f32 %v373_v46, %v366_v44 }
  0xa0   :  { %v1458_v50 = vpop.eup %1457 }
  0xa1   :  { %376 = vrot.lane.b32.xlu1 %v374_v48, %s1571_s4  ;;  %v320_v51 = vadd.f32 1.0, %v1458_v50 }
  0xa3   :  { %1459 = vrcp.f32 %v320_v51  ;;  %v332_v57 = vand.u32 2147483648, %v320_v51  ;;  %vm326_vm8 = vweird.f32 %v320_v51  ;;  %v330_v58 = vand.u32 2147483647, %v320_v51 }
  0xa5   :  { %v333_v60 = vor.u32 1.1754944e-38, %v332_v57  ;;  %vm331_vm10 = vcmp.eq.f32.partialorder %v330_v58, 8.507059e+37 }
  0xa9   :  { %v1460_v52 = vpop.eup %1459 }
  0xaa   :  { %v322_v53 = vmul.f32 %v1460_v52, %v320_v51  ;;  %vm327_vm7 = vweird.f32 %v1460_v52 }
  0xab   :  { %vm328_vm9 = vmor %vm326_vm8, %vm327_vm7 }
  0xac   :  { %v323_v54 = vsub.f32 1.0, %v322_v53 }
  0xae   :  { %v324_v55 = vmul.f32 %v1460_v52, %v323_v54 }
  0xb0   :  { %v325_v56 = vadd.f32 %v1460_v52, %v324_v55 }
  0xb2   :  { %v329_v59 = vsel %vm328_vm9, %v1460_v52, %v325_v56  ;;  %v36_v52 = vld [vmem:[%s1951_s1 + $0x4] sm:$0x3] }
  0xb3   :  { %v334_v62 = vsel %vm331_vm10, %v333_v60, %v329_v59  ;;  %v44_v53 = vadd.f32 2.7182817, %v36_v52 }
 0x111   :  { %v382_v61 = vpop.permute.xlu0 %381 }
 0x112   :  { %v384_v63 = vmul.f32 %v382_v61, %v334_v62 }
 0x113   :  { %v377_v2 = vpop.permute.xlu1 %376 }
 0x114   :  { %386 = vrot.lane.b32.xlu1 %v384_v63, %s1571_s4  ;;  %v379_v3 = vmul.f32 %v377_v2, %v334_v62 }
 0x186   :  { %v387_v5 = vpop.permute.xlu1 %386 }
 0x187   :  { %v1704_v6 = vadd.f32 %v387_v5, %v379_v3 }
 0x189   :  { %1461 = vtanh.f32 %v1704_v6  ;;  %460 = vrot.lane.b32.xlu0 %v1704_v6, %s1572_s19 }
 0x18a   :  { %1463 = vlog2.f32 %v43_v9 }
 0x18f   :  { %v1462_v7 = vpop.eup %1461 }
 0x190   :  { %392 = vrot.lane.b32.xlu2 %v1462_v7, %s1571_s4  ;;  %v1464_v10 = vpop.eup %1463 }
 0x191   :  { %v53_v12 = vmul.f32 0.6931472, %v1464_v10 }
 0x193   :  { %1465 = vrcp.f32 %v53_v12  ;;  %v92_v15 = vand.u32 2147483648, %v53_v12  ;;  %vm86_vm11 = vweird.f32 %v53_v12  ;;  %v90_v17 = vand.u32 2147483647, %v53_v12 }
 0x195   :  { %v93_v19 = vor.u32 1.1754944e-38, %v92_v15  ;;  %vm91_vm14 = vcmp.eq.f32.partialorder %v90_v17, 8.507059e+37 }
 0x199   :  { %v1466_v13 = vpop.eup %1465 }
 0x19a   :  { %v82_v14 = vmul.f32 %v1466_v13, %v53_v12  ;;  %vm87_vm12 = vweird.f32 %v1466_v13 }
 0x19b   :  { %vm88_vm13 = vmor %vm86_vm11, %vm87_vm12 }
 0x19c   :  { %v83_v16 = vsub.f32 1.0, %v82_v14 }
 0x19e   :  { %v84_v18 = vmul.f32 %v1466_v13, %v83_v16 }
 0x1a0   :  { %v85_v20 = vadd.f32 %v1466_v13, %v84_v18 }
 0x1a2   :  { %v89_v21 = vsel %vm88_vm13, %v1466_v13, %v85_v20 }
 0x1a3   :  { %v94_v22 = vsel %vm91_vm14, %v93_v19, %v89_v21 }
 0x1a4   :  { %188 = vst.msk [vmem:[#allocation3 + $0x2] sm:$0x3] %vm186_vm6, %v94_v22 }
 0x1ab   :  { %v491_v25 = vld [vmem:[#allocation3 + $0x2] sm:$0x3] }
 0x1ac   :  { %494 = vperm.xlu1 %1437, %v491_v25  }
 0x1ea   :  { %v393_v23 = vpop.permute.xlu2 %392 }
 0x1eb   :  { %v395_v24 = vmul.f32 %v393_v23, %v334_v62 }
 0x1ed   :  { %397 = vrot.lane.b32.xlu2 %v395_v24, %s1573_s21 }
 0x1fb   :  { %v461_v26 = vpop.permute.xlu0 %460 }
 0x1fc   :  { %1408 = vmatmul.msk.f32.vlgmr.msrb.gmra.mxu1 %vm292_vm15, %v461_v26  ;;  %v527_v26 = vld [vmem:[#allocation2 + $0x4] sm:$0x3] }
 0x21e   :  { %v495_v33 = vpop.permute.xlu1 %494 }
 0x247   :  { %v398_v27 = vpop.permute.xlu2 %397 }
 0x248   :  { %401 = vst.msk [vmem:[#allocation4] sm:$0x3] %vm400_vm0, %v398_v27  ;;  %1406 = vmatmul.msk.f32.vlgmr.msrb.gmra.mxu3 %vm292_vm15, %v398_v27 }
 0x249   :  { %848 = vmatpush.msrb.mxu3 %v1627_v0  ;;  %v403_v0 = vld [vmem:[#allocation2 + $0x2] sm:$0x3] }
 0x24b   :  { %849 = vmatpush.msrb.mxu3 %v1632_v1 }
 0x24d   :  { %850 = vmatpush.msrb.mxu3 %v1641_v4 }
 0x24f   :  { %v1270_v28 = vld [vmem:[#allocation4] sm:$0x3]  ;;  %851 = vmatpush.msrb.mxu3 %v1665_v11 }
 0x250   :  { %1294 = vst [vmem:[#allocation1] ss:$4 sm:$0xff] %v1270_v28 }
 0x279   :  { %v481_v30 = vpop.f32.mrf.mxu1 }
 0x27a   :  { %v482_v32 = vadd.f32 %v1441_v29, %v481_v30 }
 0x27c   :  { %1467 = vtanh.f32 %v482_v32 }
 0x282   :  { %v1468_v34 = vpop.eup %1467 }
 0x283   :  { %v497_v35 = vmul.f32 %v1468_v34, %v495_v33  ;;  %486 = vrot.lane.b32.xlu0 %v1468_v34, %s1571_s4 }
 0x285   :  { %499 = vrot.lane.b32.xlu1 %v497_v35, %s1571_s4 }
 0x2cb   :  { %v427_v1 = vpop.f32.mrf.mxu3 }
 0x2cc   :  { %v430_v4 = vadd.f32 %v427_v1, %v403_v0 }
 0x2ce   :  { %1469 = vtanh.f32 %v430_v4  ;;  %v1407_v37 = vmul.f32 -1.442695, %v430_v4 }
 0x2d0   :  { %1471 = vpow2.f32 %v1407_v37 }
 0x2d4   :  { %v1470_v36 = vpop.eup %1469 }
 0x2d5   :  { %505 = vrot.lane.b32.xlu2 %v1470_v36, %s1571_s4 }
 0x2d6   :  { %v1472_v38 = vpop.eup %1471 }
 0x2d7   :  { %v434_v39 = vadd.f32 1.0, %v1472_v38 }
 0x2d9   :  { %1473 = vrcp.f32 %v434_v39  ;;  %v446_v45 = vand.u32 2147483648, %v434_v39  ;;  %vm440_vm3 = vweird.f32 %v434_v39  ;;  %v444_v46 = vand.u32 2147483647, %v434_v39 }
 0x2da   :  { %1475 = vlog2.f32 %v44_v53  ;;  %v199_v53 = vld [vmem:[%s1949_s0 + $0x8] sm:$0x3] }
 0x2db   :  { %v447_v48 = vor.u32 1.1754944e-38, %v446_v45  ;;  %vm445_vm5 = vcmp.eq.f32.partialorder %v444_v46, 8.507059e+37  ;;  %224 = vst [vmem:[#allocation1 + $0x20] ss:$4 sm:$0xff] %v199_v53 }
 0x2df   :  { %v1474_v40 = vpop.eup %1473 }
 0x2e0   :  { %v436_v41 = vmul.f32 %v1474_v40, %v434_v39  ;;  %vm441_vm2 = vweird.f32 %v1474_v40  ;;  %v1476_v54 = vpop.eup %1475 }
 0x2e1   :  { %vm442_vm4 = vmor %vm440_vm3, %vm441_vm2  ;;  %v55_v55 = vmul.f32 0.6931472, %v1476_v54  ;;  %v200_v54 = vld [vmem:[%s1949_s0 + $0xa] sm:$0x3] }
 0x2e2   :  { %v437_v42 = vsub.f32 1.0, %v436_v41  ;;  %226 = vst [vmem:[#allocation1 + $0x21] ss:$4 sm:$0xff] %v200_v54 }
 0x2e3   :  { %1477 = vrcp.f32 %v55_v55  ;;  %v107_v60 = vand.u32 2147483648, %v55_v55  ;;  %vm101_vm7 = vweird.f32 %v55_v55  ;;  %v105_v62 = vand.u32 2147483647, %v55_v55 }
 0x2e4   :  { %v438_v43 = vmul.f32 %v1474_v40, %v437_v42 }
 0x2e5   :  { %v108_v63 = vor.u32 1.1754944e-38, %v107_v60  ;;  %vm106_vm10 = vcmp.eq.f32.partialorder %v105_v62, 8.507059e+37 }
 0x2e6   :  { %v439_v44 = vadd.f32 %v1474_v40, %v438_v43 }
 0x2e8   :  { %v443_v47 = vsel %vm442_vm4, %v1474_v40, %v439_v44 }
 0x2e9   :  { %v448_v50 = vsel %vm445_vm5, %v447_v48, %v443_v47  ;;  %v1478_v56 = vpop.eup %1477 }
 0x2ea   :  { %v97_v57 = vmul.f32 %v1478_v56, %v55_v55  ;;  %vm102_vm8 = vweird.f32 %v1478_v56  ;;  %v201_v55 = vld [vmem:[%s1949_s0 + $0xc] sm:$0x3] }
 0x2eb   :  { %vm103_vm9 = vmor %vm101_vm7, %vm102_vm8  ;;  %228 = vst [vmem:[#allocation1 + $0x22] ss:$4 sm:$0xff] %v201_v55 }
 0x2ec   :  { %v98_v58 = vsub.f32 1.0, %v97_v57 }
 0x2ee   :  { %v99_v59 = vmul.f32 %v1478_v56, %v98_v58 }
 0x2f0   :  { %v100_v61 = vadd.f32 %v1478_v56, %v99_v59 }
 0x2f2   :  { %v104_v2 = vsel %vm103_vm9, %v1478_v56, %v100_v61  ;;  %v202_v56 = vld [vmem:[%s1949_s0 + $0xe] sm:$0x3] }
 0x2f3   :  { %v109_v3 = vsel %vm106_vm10, %v108_v63, %v104_v2  ;;  %230 = vst [vmem:[#allocation1 + $0x23] ss:$4 sm:$0xff] %v202_v56 }
 0x2f4   :  { %189 = vst.msk [vmem:[#allocation3 + $0x4] sm:$0x3] %vm186_vm6, %v109_v3 }
 0x2f5   :  { %v487_v5 = vpop.permute.xlu0 %486 }
 0x2f6   :  { %v489_v7 = vsub.f32 %v1704_v6, %v487_v5  ;;  %v1442_v6 = vld [vmem:[%s1953_s6] ss:$0 sm:$0xff] }
 0x2f7   :  { %v500_v8 = vpop.permute.xlu1 %499 }
 0x2f8   :  { %v502_v9 = vadd.f32 %v500_v8, %v489_v7 }
 0x2fa   :  { %v503_v10 = vmul.f32 %v502_v9, %v448_v50  ;;  %v232_v61 = vld.sshfl [vmem:[#allocation1 + $0x20] sm:$0xff pattern:$0x73625140] }
 0x2fb   :  { %v615_v15 = vld [vmem:[#allocation3 + $0x4] sm:$0x3]  ;;  %1404 = vmatmul.msk.f32.gmra.mxu0 %vm233_vm1, %v232_v61 }
 0x32f   :  { %v506_v49 = vpop.permute.xlu2 %505 }
 0x330   :  { %v508_v51 = vmul.f32 %v506_v49, %v448_v50 }
 0x332   :  { %510 = vrot.lane.b32.xlu2 %v508_v51, %s1571_s4  ;;  %v37_v51 = vld [vmem:[%s1951_s1 + $0x6] sm:$0x3] }
 0x333   :  { %v45_v52 = vadd.f32 2.7182817, %v37_v51 }
 0x38c   :  { %v511_v12 = vpop.permute.xlu2 %510 }
 0x38d   :  { %v513_v13 = vadd.f32 %v511_v12, %v503_v10 }
 0x38f   :  { %1479 = vtanh.f32 %v513_v13  ;;  %584 = vrot.lane.b32.xlu2 %v513_v13, %s1572_s19 }
 0x395   :  { %v1480_v14 = vpop.eup %1479 }
 0x396   :  { %516 = vrot.lane.b32.xlu0 %v1480_v14, %s1571_s4 }
 0x39e   :  { %618 = vperm.xlu0 %1436, %v615_v15  }
 0x3e9   :  { %v585_v16 = vpop.permute.xlu2 %584 }
 0x3ea   :  { %1411 = vmatmul.msk.f32.vlgmr.msra.gmra.mxu3 %vm292_vm15, %v585_v16 }
 0x408   :  { %v517_v17 = vpop.permute.xlu0 %516 }
 0x409   :  { %v519_v18 = vmul.f32 %v517_v17, %v448_v50  ;;  %v262_v17 = vpop.f32.mrf.mxu0 }
 0x40b   :  { %521 = vrot.lane.b32.xlu1 %v519_v18, %s1573_s21  ;;  %v263_v18 = vadd.f32 %v1695_v31, %v262_v17  ;;  %v651_v31 = vld [vmem:[#allocation2 + $0x6] sm:$0x3] }
 0x40d   :  { %283 = vst [vmem:[#allocation2 + $0x8] sm:$0x3] %v263_v18 }
 0x410   :  { %v619_v22 = vpop.permute.xlu0 %618 }
 0x46d   :  { %v605_v19 = vpop.f32.mrf.mxu3 }
 0x46e   :  { %v606_v20 = vadd.f32 %v1442_v6, %v605_v19  ;;  %v270_v6 = vrot.slane %v263_v18, 2  ;;  %v271_v19 = vrot.slane %v263_v18, 4 }
 0x470   :  { %1481 = vtanh.f32 %v606_v20  ;;  %v272_v20 = vrot.slane %v263_v18, 6  ;;  %284 = vst [vmem:[#allocation2 + $0xa] sm:$0x3] %v270_v6  ;;  %v775_v18 = vld [vmem:[#allocation2 + $0x8] sm:$0x3] }
 0x471   :  { %285 = vst [vmem:[#allocation2 + $0xc] sm:$0x3] %v271_v19 }
 0x472   :  { %286 = vst [vmem:[#allocation2 + $0xe] sm:$0x3] %v272_v20 }
 0x476   :  { %v1482_v21 = vpop.eup %1481 }
 0x477   :  { %610 = vrot.lane.b32.xlu2 %v1482_v21, %s1571_s4  ;;  %v621_v23 = vmul.f32 %v1482_v21, %v619_v22  ;;  %v1443_v21 = vld [vmem:[%s1953_s6] ss:$0 sm:$0xff] }
 0x479   :  { %623 = vrot.lane.b32.xlu0 %v621_v23, %s1571_s4 }
 0x47d   :  { %v522_v24 = vpop.permute.xlu1 %521 }
 0x47e   :  { %525 = vst.msk [vmem:[#allocation4 + $0x2] sm:$0x3] %vm400_vm0, %v522_v24  ;;  %1409 = vmatmul.msk.f32.vlgmr.msra.gmra.mxu2 %vm292_vm15, %v522_v24 }
 0x485   :  { %v1271_v25 = vld [vmem:[#allocation4 + $0x2] sm:$0x3] }
 0x486   :  { %1296 = vst [vmem:[#allocation1 + $0x1] ss:$4 sm:$0xff] %v1271_v25 }
 0x4d1   :  { %v611_v43 = vpop.permute.xlu2 %610 }
 0x4d2   :  { %v613_v45 = vsub.f32 %v513_v13, %v611_v43  ;;  %v38_v43 = vld [vmem:[%s1951_s1 + $0x8] sm:$0x3] }
 0x4eb   :  { %v624_v44 = vpop.permute.xlu0 %623 }
 0x4ec   :  { %v626_v46 = vadd.f32 %v624_v44, %v613_v45  ;;  %v46_v44 = vadd.f32 2.7182817, %v38_v43 }
 0x501   :  { %v551_v27 = vpop.f32.mrf.mxu2 }
 0x502   :  { %v554_v28 = vadd.f32 %v551_v27, %v527_v26 }
 0x504   :  { %1483 = vtanh.f32 %v554_v28  ;;  %v1410_v30 = vmul.f32 -1.442695, %v554_v28 }
 0x506   :  { %1485 = vpow2.f32 %v1410_v30 }
 0x50a   :  { %v1484_v29 = vpop.eup %1483 }
 0x50b   :  { %629 = vrot.lane.b32.xlu1 %v1484_v29, %s1571_s4 }
 0x50c   :  { %v1486_v32 = vpop.eup %1485 }
 0x50d   :  { %v558_v33 = vadd.f32 1.0, %v1486_v32 }
 0x50f   :  { %1487 = vrcp.f32 %v558_v33  ;;  %v570_v36 = vand.u32 2147483648, %v558_v33  ;;  %vm564_vm12 = vweird.f32 %v558_v33  ;;  %v568_v37 = vand.u32 2147483647, %v558_v33 }
 0x511   :  { %v571_v39 = vor.u32 1.1754944e-38, %v570_v36  ;;  %vm569_vm14 = vcmp.eq.f32.partialorder %v568_v37, 8.507059e+37 }
 0x515   :  { %v1488_v34 = vpop.eup %1487 }
 0x516   :  { %v560_v35 = vmul.f32 %v1488_v34, %v558_v33  ;;  %vm565_vm11 = vweird.f32 %v1488_v34 }
 0x517   :  { %vm566_vm13 = vmor %vm564_vm12, %vm565_vm11 }
 0x518   :  { %v561_v0 = vsub.f32 1.0, %v560_v35 }
 0x51a   :  { %v562_v1 = vmul.f32 %v1488_v34, %v561_v0 }
 0x51c   :  { %v563_v4 = vadd.f32 %v1488_v34, %v562_v1 }
 0x51e   :  { %v567_v38 = vsel %vm566_vm13, %v1488_v34, %v563_v4 }
 0x51f   :  { %v572_v41 = vsel %vm569_vm14, %v571_v39, %v567_v38 }
 0x520   :  { %v627_v47 = vmul.f32 %v626_v46, %v572_v41 }
 0x57d   :  { %v630_v40 = vpop.permute.xlu1 %629 }
 0x57e   :  { %v632_v42 = vmul.f32 %v630_v40, %v572_v41 }
 0x580   :  { %634 = vrot.lane.b32.xlu1 %v632_v42, %s1571_s4 }
 0x5f2   :  { %v635_v48 = vpop.permute.xlu1 %634 }
 0x5f3   :  { %v1747_v49 = vadd.f32 %v635_v48, %v627_v47 }
 0x5f5   :  { %1489 = vtanh.f32 %v1747_v49  ;;  %708 = vrot.lane.b32.xlu1 %v1747_v49, %s1572_s19 }
 0x5f6   :  { %1491 = vlog2.f32 %v45_v52 }
 0x5fb   :  { %v1490_v50 = vpop.eup %1489 }
 0x5fc   :  { %640 = vrot.lane.b32.xlu2 %v1490_v50, %s1571_s4  ;;  %v1492_v57 = vpop.eup %1491 }
 0x5fd   :  { %v57_v58 = vmul.f32 0.6931472, %v1492_v57 }
 0x5ff   :  { %1493 = vrcp.f32 %v57_v58  ;;  %v122_v2 = vand.u32 2147483648, %v57_v58  ;;  %vm116_vm2 = vweird.f32 %v57_v58  ;;  %v120_v5 = vand.u32 2147483647, %v57_v58 }
 0x601   :  { %v123_v8 = vor.u32 1.1754944e-38, %v122_v2  ;;  %vm121_vm5 = vcmp.eq.f32.partialorder %v120_v5, 8.507059e+37 }
 0x605   :  { %v1494_v62 = vpop.eup %1493 }
 0x606   :  { %v112_v63 = vmul.f32 %v1494_v62, %v57_v58  ;;  %vm117_vm3 = vweird.f32 %v1494_v62 }
 0x607   :  { %vm118_vm4 = vmor %vm116_vm2, %vm117_vm3 }
 0x608   :  { %v113_v3 = vsub.f32 1.0, %v112_v63 }
 0x60a   :  { %v114_v7 = vmul.f32 %v1494_v62, %v113_v3 }
 0x60c   :  { %v115_v9 = vadd.f32 %v1494_v62, %v114_v7 }
 0x60e   :  { %v119_v10 = vsel %vm118_vm4, %v1494_v62, %v115_v9 }
 0x60f   :  { %v124_v12 = vsel %vm121_vm5, %v123_v8, %v119_v10 }
 0x610   :  { %190 = vst.msk [vmem:[#allocation3 + $0x6] sm:$0x3] %vm186_vm6, %v124_v12  ;;  %v1444_v12 = vld [vmem:[%s1953_s6] ss:$0 sm:$0xff] }
 0x617   :  { %v739_v14 = vld [vmem:[#allocation3 + $0x6] sm:$0x3] }
 0x618   :  { %742 = vperm.xlu2 %1438, %v739_v14  }
 0x656   :  { %v641_v59 = vpop.permute.xlu2 %640 }
 0x657   :  { %v643_v60 = vmul.f32 %v641_v59, %v572_v41 }
 0x659   :  { %645 = vrot.lane.b32.xlu0 %v643_v60, %s1573_s21 }
 0x667   :  { %v709_v13 = vpop.permute.xlu1 %708 }
 0x668   :  { %1414 = vmatmul.msk.f32.vlgmr.msra.gmra.mxu1 %vm292_vm15, %v709_v13 }
 0x672   :  { %v743_v24 = vpop.permute.xlu2 %742 }
 0x6cb   :  { %v646_v15 = vpop.permute.xlu0 %645 }
 0x6cc   :  { %649 = vst.msk [vmem:[#allocation4 + $0x4] sm:$0x3] %vm400_vm0, %v646_v15  ;;  %1412 = vmatmul.msk.f32.vlgmr.msrb.gmra.mxu0 %vm292_vm15, %v646_v15 }
 0x6d3   :  { %v1272_v16 = vld [vmem:[#allocation4 + $0x4] sm:$0x3] }
 0x6d4   :  { %1298 = vst [vmem:[#allocation1 + $0x2] ss:$4 sm:$0xff] %v1272_v16 }
 0x6e5   :  { %v729_v22 = vpop.f32.mrf.mxu1 }
 0x6e6   :  { %v730_v23 = vadd.f32 %v1443_v21, %v729_v22 }
 0x6e8   :  { %1495 = vtanh.f32 %v730_v23 }
 0x6ee   :  { %v1496_v25 = vpop.eup %1495 }
 0x6ef   :  { %v745_v26 = vmul.f32 %v1496_v25, %v743_v24  ;;  %734 = vrot.lane.b32.xlu1 %v1496_v25, %s1571_s4 }
 0x6f1   :  { %747 = vrot.lane.b32.xlu2 %v745_v26, %s1571_s4 }
 0x749   :  { %v675_v27 = vpop.f32.mrf.mxu0 }
 0x74a   :  { %v678_v28 = vadd.f32 %v675_v27, %v651_v31 }
 0x74b   :  { %v748_v60 = vpop.permute.xlu2 %747 }
 0x74c   :  { %1497 = vtanh.f32 %v678_v28  ;;  %v1413_v30 = vmul.f32 -1.442695, %v678_v28 }
 0x74e   :  { %1499 = vpow2.f32 %v1413_v30 }
 0x752   :  { %v1498_v29 = vpop.eup %1497 }
 0x753   :  { %753 = vrot.lane.b32.xlu0 %v1498_v29, %s1571_s4 }
 0x754   :  { %v1500_v32 = vpop.eup %1499 }
 0x755   :  { %v682_v33 = vadd.f32 1.0, %v1500_v32 }
 0x757   :  { %1501 = vrcp.f32 %v682_v33  ;;  %v694_v36 = vand.u32 2147483648, %v682_v33  ;;  %vm688_vm7 = vweird.f32 %v682_v33  ;;  %v692_v37 = vand.u32 2147483647, %v682_v33 }
 0x758   :  { %1503 = vlog2.f32 %v46_v44 }
 0x759   :  { %v695_v39 = vor.u32 1.1754944e-38, %v694_v36  ;;  %vm693_vm9 = vcmp.eq.f32.partialorder %v692_v37, 8.507059e+37 }
 0x75d   :  { %v1502_v34 = vpop.eup %1501 }
 0x75e   :  { %v684_v35 = vmul.f32 %v1502_v34, %v682_v33  ;;  %vm689_vm1 = vweird.f32 %v1502_v34  ;;  %v1504_v45 = vpop.eup %1503 }
 0x75f   :  { %vm690_vm8 = vmor %vm688_vm7, %vm689_vm1  ;;  %v59_v46 = vmul.f32 0.6931472, %v1504_v45 }
 0x760   :  { %v685_v0 = vsub.f32 1.0, %v684_v35 }
 0x761   :  { %1505 = vrcp.f32 %v59_v46  ;;  %v137_v52 = vand.u32 2147483648, %v59_v46  ;;  %vm131_vm10 = vweird.f32 %v59_v46  ;;  %v135_v54 = vand.u32 2147483647, %v59_v46  ;;  %v735_v58 = vpop.permute.xlu1 %734 }
 0x762   :  { %v686_v1 = vmul.f32 %v1502_v34, %v685_v0  ;;  %v737_v59 = vsub.f32 %v1747_v49, %v735_v58  ;;  %v39_v0 = vld [vmem:[%s1951_s1 + $0xa] sm:$0x3] }
 0x763   :  { %v138_v55 = vor.u32 1.1754944e-38, %v137_v52  ;;  %vm136_vm13 = vcmp.eq.f32.partialorder %v135_v54, 8.507059e+37 }
 0x764   :  { %v687_v4 = vadd.f32 %v1502_v34, %v686_v1  ;;  %v750_v61 = vadd.f32 %v748_v60, %v737_v59  ;;  %v47_v1 = vadd.f32 2.7182817, %v39_v0 }
 0x766   :  { %v691_v38 = vsel %vm690_vm8, %v1502_v34, %v687_v4 }
 0x767   :  { %v696_v41 = vsel %vm693_vm9, %v695_v39, %v691_v38  ;;  %v1506_v47 = vpop.eup %1505 }
 0x768   :  { %v127_v48 = vmul.f32 %v1506_v47, %v59_v46  ;;  %vm132_vm11 = vweird.f32 %v1506_v47  ;;  %v751_v62 = vmul.f32 %v750_v61, %v696_v41 }
 0x769   :  { %vm133_vm12 = vmor %vm131_vm10, %vm132_vm11 }
 0x76a   :  { %v128_v50 = vsub.f32 1.0, %v127_v48  ;;  %v949_v48 = vld [vmem:[%s1947_s5 + $0x10] sm:$0xff] }
 0x76c   :  { %v129_v51 = vmul.f32 %v1506_v47, %v128_v50  ;;  %v948_v50 = vld [vmem:[%s1947_s5 + $0x8] sm:$0xff] }
 0x76e   :  { %v130_v53 = vadd.f32 %v1506_v47, %v129_v51 }
 0x770   :  { %v134_v56 = vsel %vm133_vm12, %v1506_v47, %v130_v53  ;;  %v950_v47 = vld [vmem:[%s1947_s5 + $0x18] sm:$0xff] }
 0x771   :  { %v139_v57 = vsel %vm136_vm13, %v138_v55, %v134_v56  ;;  %972 = vmatpush.msrb.mxu1 %v950_v47  ;;  %1096 = vmatpush.msra.mxu3 %v950_v47 }
 0x772   :  { %191 = vst.msk [vmem:[#allocation3 + $0x8] sm:$0x3] %vm186_vm6, %v139_v57 }
 0x773   :  { %973 = vmatpush.msrb.mxu1 %v949_v48  ;;  %1097 = vmatpush.msra.mxu3 %v949_v48 }
 0x775   :  { %974 = vmatpush.msrb.mxu1 %v948_v50  ;;  %1098 = vmatpush.msra.mxu3 %v948_v50 }
 0x777   :  { %975 = vmatpush.msrb.mxu1 %v1665_v11 }
 0x779   :  { %v863_v5 = vld [vmem:[#allocation3 + $0x8] sm:$0x3]  ;;  %1220 = vmatpush.msra.mxu1 %v950_v47 }
 0x77b   :  { %1221 = vmatpush.msra.mxu1 %v949_v48 }
 0x77d   :  { %1222 = vmatpush.msra.mxu1 %v948_v50 }
 0x7c5   :  { %v754_v40 = vpop.permute.xlu0 %753 }
 0x7c6   :  { %v756_v42 = vmul.f32 %v754_v40, %v696_v41 }
 0x7c8   :  { %758 = vrot.lane.b32.xlu0 %v756_v42, %s1571_s4 }
 0x83a   :  { %v759_v63 = vpop.permute.xlu0 %758 }
 0x83b   :  { %v1787_v2 = vadd.f32 %v759_v63, %v751_v62  ;;  %v903_v62 = vld [vmem:[%s1950_s3 + $0x18] sm:$0xff]  ;;  %v902_v63 = vld [vmem:[%s1950_s3 + $0x10] sm:$0xff] }
 0x83c   :  { %918 = vmatpush.msra.mxu0 %v903_v62  ;;  %1042 = vmatpush.msra.mxu2 %v903_v62 }
 0x83d   :  { %1507 = vtanh.f32 %v1787_v2  ;;  %832 = vrot.lane.b32.xlu0 %v1787_v2, %s1572_s19 }
 0x83e   :  { %919 = vmatpush.msra.mxu0 %v902_v63  ;;  %1043 = vmatpush.msra.mxu2 %v902_v63 }
 0x843   :  { %v1508_v3 = vpop.eup %1507 }
 0x844   :  { %764 = vrot.lane.b32.xlu1 %v1508_v3, %s1571_s4  ;;  %v900_v3 = vld [vmem:[%s1950_s3] sm:$0xff] }
 0x84c   :  { %866 = vperm.xlu1 %1437, %v863_v5   ;;  %v1445_v5 = vld [vmem:[%s1953_s6] ss:$0 sm:$0xff] }
 0x8af   :  { %v833_v7 = vpop.permute.xlu0 %832 }
 0x8b0   :  { %1417 = vmatmul.msk.f32.vlgmr.msrb.gmra.mxu3 %vm292_vm15, %v833_v7 }
 0x8b6   :  { %v765_v49 = vpop.permute.xlu1 %764 }
 0x8b7   :  { %v767_v8 = vmul.f32 %v765_v49, %v696_v41 }
 0x8b9   :  { %769 = vrot.lane.b32.xlu2 %v767_v8, %s1573_s21 }
 0x8be   :  { %v867_v16 = vpop.permute.xlu1 %866 }
 0x913   :  { %v770_v9 = vpop.permute.xlu2 %769 }
 0x914   :  { %773 = vst.msk [vmem:[#allocation4 + $0x6] sm:$0x3] %vm400_vm0, %v770_v9  ;;  %1415 = vmatmul.msk.f32.vlgmr.msrb.gmra.mxu2 %vm292_vm15, %v770_v9 }
 0x91b   :  { %v1273_v10 = vld [vmem:[#allocation4 + $0x6] sm:$0x3] }
 0x91c   :  { %1300 = vst [vmem:[#allocation1 + $0x3] ss:$4 sm:$0xff] %v1273_v10 }
 0x933   :  { %v853_v13 = vpop.f32.mrf.mxu3 }
 0x934   :  { %v854_v14 = vadd.f32 %v1444_v12, %v853_v13 }
 0x936   :  { %1509 = vtanh.f32 %v854_v14  ;;  %v899_v14 = vld [vmem:[#allocation2 + $0xa] sm:$0x3] }
 0x93c   :  { %v1510_v15 = vpop.eup %1509 }
 0x93d   :  { %858 = vrot.lane.b32.xlu0 %v1510_v15, %s1571_s4  ;;  %v869_v17 = vmul.f32 %v1510_v15, %v867_v16 }
 0x93f   :  { %871 = vrot.lane.b32.xlu1 %v869_v17, %s1571_s4 }
 0x997   :  { %v799_v6 = vpop.f32.mrf.mxu2 }
 0x998   :  { %v802_v19 = vadd.f32 %v799_v6, %v775_v18 }
 0x99a   :  { %1511 = vtanh.f32 %v802_v19  ;;  %v1416_v21 = vmul.f32 -1.442695, %v802_v19 }
 0x99c   :  { %1513 = vpow2.f32 %v1416_v21 }
 0x9a0   :  { %v1512_v20 = vpop.eup %1511 }
 0x9a1   :  { %877 = vrot.lane.b32.xlu2 %v1512_v20, %s1571_s4 }
 0x9a2   :  { %v1514_v22 = vpop.eup %1513 }
 0x9a3   :  { %v806_v23 = vadd.f32 1.0, %v1514_v22 }
 0x9a5   :  { %1515 = vrcp.f32 %v806_v23  ;;  %v818_v28 = vand.u32 2147483648, %v806_v23  ;;  %vm812_vm2 = vweird.f32 %v806_v23  ;;  %v816_v29 = vand.u32 2147483647, %v806_v23 }
 0x9a6   :  { %1517 = vlog2.f32 %v47_v1 }
 0x9a7   :  { %v819_v32 = vor.u32 1.1754944e-38, %v818_v28  ;;  %vm817_vm4 = vcmp.eq.f32.partialorder %v816_v29, 8.507059e+37 }
 0x9ab   :  { %v1516_v24 = vpop.eup %1515 }
 0x9ac   :  { %v808_v25 = vmul.f32 %v1516_v24, %v806_v23  ;;  %vm813_vm14 = vweird.f32 %v1516_v24  ;;  %v1518_v4 = vpop.eup %1517 }
 0x9ad   :  { %vm814_vm3 = vmor %vm812_vm2, %vm813_vm14  ;;  %v61_v36 = vmul.f32 0.6931472, %v1518_v4 }
 0x9ae   :  { %v809_v26 = vsub.f32 1.0, %v808_v25 }
 0x9af   :  { %1519 = vrcp.f32 %v61_v36  ;;  %v152_v41 = vand.u32 2147483648, %v61_v36  ;;  %vm146_vm5 = vweird.f32 %v61_v36  ;;  %v150_v43 = vand.u32 2147483647, %v61_v36  ;;  %v859_v51 = vpop.permute.xlu0 %858 }
 0x9b0   :  { %v810_v31 = vmul.f32 %v1516_v24, %v809_v26  ;;  %v861_v52 = vsub.f32 %v1787_v2, %v859_v51  ;;  %v901_v2 = vld [vmem:[%s1950_s3 + $0x8] sm:$0xff] }
 0x9b1   :  { %v153_v44 = vor.u32 1.1754944e-38, %v152_v41  ;;  %vm151_vm8 = vcmp.eq.f32.partialorder %v150_v43, 8.507059e+37  ;;  %v872_v53 = vpop.permute.xlu1 %871  ;;  %920 = vmatpush.msra.mxu0 %v901_v2  ;;  %1044 = vmatpush.msra.mxu2 %v901_v2 }
 0x9b2   :  { %v811_v27 = vadd.f32 %v1516_v24, %v810_v31  ;;  %v874_v54 = vadd.f32 %v872_v53, %v861_v52  ;;  %v1071_v53 = vld [vmem:[%s1947_s5] sm:$0xff] }
 0x9b3   :  { %921 = vmatpush.msra.mxu0 %v900_v3  ;;  %1045 = vmatpush.msra.mxu2 %v900_v3 }
 0x9b4   :  { %v815_v30 = vsel %vm814_vm3, %v1516_v24, %v811_v27  ;;  %1099 = vmatpush.msra.mxu3 %v1071_v53  ;;  %1223 = vmatpush.msra.mxu1 %v1071_v53 }
 0x9b5   :  { %v820_v34 = vsel %vm817_vm4, %v819_v32, %v815_v30  ;;  %v1520_v37 = vpop.eup %1519  ;;  %1166 = vmatpush.msrb.mxu0 %v903_v62  ;;  %v40_v32 = vld [vmem:[%s1951_s1 + $0xc] sm:$0x3]  ;;  %v1309_v62 = vld.sshfl [vmem:[#allocation1] sm:$0xff pattern:$0x73625140] }
 0x9b6   :  { %v142_v38 = vmul.f32 %v1520_v37, %v61_v36  ;;  %vm147_vm1 = vweird.f32 %v1520_v37  ;;  %v875_v55 = vmul.f32 %v874_v54, %v820_v34 }
 0x9b7   :  { %vm148_vm7 = vmor %vm146_vm5, %vm147_vm1  ;;  %1167 = vmatpush.msrb.mxu0 %v902_v63  ;;  %v1446_v63 = vld [vmem:[%s1953_s6] ss:$0 sm:$0xff] }
 0x9b8   :  { %v143_v39 = vsub.f32 1.0, %v142_v38 }
 0x9b9   :  { %1168 = vmatpush.msrb.mxu0 %v901_v2 }
 0x9ba   :  { %v144_v40 = vmul.f32 %v1520_v37, %v143_v39 }
 0x9bb   :  { %1169 = vmatpush.msrb.mxu0 %v900_v3 }
 0x9bc   :  { %v145_v42 = vadd.f32 %v1520_v37, %v144_v40 }
 0x9be   :  { %v149_v45 = vsel %vm148_vm7, %v1520_v37, %v145_v42 }
 0x9bf   :  { %v154_v46 = vsel %vm151_vm8, %v153_v44, %v149_v45 }
 0x9c0   :  { %192 = vst.msk [vmem:[#allocation3 + $0xa] sm:$0x3] %vm186_vm6, %v154_v46 }
 0x9c7   :  { %v987_v59 = vld [vmem:[#allocation3 + $0xa] sm:$0x3] }
 0x9fb   :  { %v878_v33 = vpop.permute.xlu2 %877 }
 0x9fc   :  { %v880_v35 = vmul.f32 %v878_v33, %v820_v34  ;;  %v48_v33 = vadd.f32 2.7182817, %v40_v32 }
 0x9fe   :  { %882 = vrot.lane.b32.xlu2 %v880_v35, %s1571_s4 }
 0xa58   :  { %v883_v56 = vpop.permute.xlu2 %882 }
 0xa59   :  { %v1819_v57 = vadd.f32 %v883_v56, %v875_v55 }
 0xa5b   :  { %1521 = vtanh.f32 %v1819_v57  ;;  %956 = vrot.lane.b32.xlu2 %v1819_v57, %s1572_s19 }
 0xa61   :  { %v1522_v58 = vpop.eup %1521 }
 0xa62   :  { %888 = vrot.lane.b32.xlu0 %v1522_v58, %s1571_s4  ;;  %v1280_v58 = vld [vmem:[%s1954_s7 + $0x10] sm:$0xff] }
 0xa6a   :  { %990 = vperm.xlu0 %1436, %v987_v59   ;;  %v1279_v59 = vld [vmem:[%s1954_s7 + $0x8] sm:$0xff] }
 0xab5   :  { %v957_v11 = vpop.permute.xlu2 %956 }
 0xab6   :  { %1420 = vmatmul.msk.f32.vlgmr.msrb.gmra.mxu1 %vm292_vm15, %v957_v11  ;;  %v1278_v11 = vld [vmem:[%s1954_s7] sm:$0xff] }
 0xad4   :  { %v889_v60 = vpop.permute.xlu0 %888 }
 0xad5   :  { %v891_v61 = vmul.f32 %v889_v60, %v820_v34 }
 0xad7   :  { %893 = vrot.lane.b32.xlu1 %v891_v61, %s1573_s21 }
 0xadc   :  { %v991_v9 = vpop.permute.xlu0 %990 }
 0xb33   :  { %v977_v7 = vpop.f32.mrf.mxu1 }
 0xb34   :  { %v978_v49 = vadd.f32 %v1445_v5, %v977_v7 }
 0xb36   :  { %1523 = vtanh.f32 %v978_v49 }
 0xb3c   :  { %v1524_v8 = vpop.eup %1523 }
 0xb3d   :  { %982 = vrot.lane.b32.xlu2 %v1524_v8, %s1571_s4  ;;  %v993_v10 = vmul.f32 %v1524_v8, %v991_v9  ;;  %v14_v8 = vstv %s1955_s8  ;;  %v1023_v9 = vld [vmem:[#allocation2 + $0xc] sm:$0x3] }
 0xb3e   :  { %15 = vst [vmem:[#allocation5] sm:$0x1] %v14_v8 }
 0xb3f   :  { %995 = vrot.lane.b32.xlu0 %v993_v10, %s1571_s4 }
 0xb49   :  { %v894_v12 = vpop.permute.xlu1 %893 }
 0xb4a   :  { %897 = vst.msk [vmem:[#allocation4 + $0x8] sm:$0x3] %vm400_vm0, %v894_v12  ;;  %1418 = vmatmul.msk.f32.vlgmr.msra.gmra.mxu0 %vm292_vm15, %v894_v12 }
 0xb51   :  { %v1274_v13 = vld [vmem:[#allocation4 + $0x8] sm:$0x3] }
 0xb52   :  { %1302 = vst [vmem:[#allocation1 + $0x20] ss:$4 sm:$0xff] %v1274_v13  ;;  %v1887_v13 = vld [vmem:[#allocation5] ss:$0 sm:$0xff] }
 0xb97   :  { %v983_v43 = vpop.permute.xlu2 %982 }
 0xb98   :  { %v985_v45 = vsub.f32 %v1819_v57, %v983_v43  ;;  %v1281_v57 = vld [vmem:[%s1954_s7 + $0x18] sm:$0xff] }
 0xb99   :  { %1327 = vmatpush.msrb.mxu2 %v1281_v57 }
 0xb9b   :  { %1328 = vmatpush.msrb.mxu2 %v1280_v58 }
 0xb9d   :  { %1329 = vmatpush.msrb.mxu2 %v1279_v59 }
 0xb9f   :  { %1330 = vmatpush.msrb.mxu2 %v1278_v11 }
 0xbb1   :  { %v996_v44 = vpop.permute.xlu0 %995 }
 0xbb2   :  { %v998_v46 = vadd.f32 %v996_v44, %v985_v45  ;;  %v41_v44 = vld [vmem:[%s1951_s1 + $0xe] sm:$0x3] }
 0xbb3   :  { %v49_v45 = vadd.f32 2.7182817, %v41_v44 }
 0xbc7   :  { %v923_v15 = vpop.f32.mrf.mxu0 }
 0xbc8   :  { %v926_v16 = vadd.f32 %v923_v15, %v899_v14 }
 0xbca   :  { %1525 = vtanh.f32 %v926_v16  ;;  %v1419_v18 = vmul.f32 -1.442695, %v926_v16 }
 0xbcc   :  { %1527 = vpow2.f32 %v1419_v18 }
 0xbd0   :  { %v1526_v17 = vpop.eup %1525 }
 0xbd1   :  { %1001 = vrot.lane.b32.xlu1 %v1526_v17, %s1571_s4 }
 0xbd2   :  { %v1528_v6 = vpop.eup %1527 }
 0xbd3   :  { %v930_v19 = vadd.f32 1.0, %v1528_v6 }
 0xbd5   :  { %1529 = vrcp.f32 %v930_v19  ;;  %v942_v25 = vand.u32 2147483648, %v930_v19  ;;  %vm936_vm10 = vweird.f32 %v930_v19  ;;  %v940_v26 = vand.u32 2147483647, %v930_v19 }
 0xbd6   :  { %1531 = vlog2.f32 %v48_v33 }
 0xbd7   :  { %v943_v27 = vor.u32 1.1754944e-38, %v942_v25  ;;  %vm941_vm12 = vcmp.eq.f32.partialorder %v940_v26, 8.507059e+37 }
 0xbdb   :  { %v1530_v20 = vpop.eup %1529 }
 0xbdc   :  { %v932_v21 = vmul.f32 %v1530_v20, %v930_v19  ;;  %vm937_vm9 = vweird.f32 %v1530_v20  ;;  %v1532_v34 = vpop.eup %1531 }
 0xbdd   :  { %vm938_vm11 = vmor %vm936_vm10, %vm937_vm9  ;;  %v63_v35 = vmul.f32 0.6931472, %v1532_v34 }
 0xbde   :  { %v933_v22 = vsub.f32 1.0, %v932_v21 }
 0xbdf   :  { %1533 = vrcp.f32 %v63_v35  ;;  %v167_v37 = vand.u32 2147483648, %v63_v35  ;;  %vm161_vm13 = vweird.f32 %v63_v35  ;;  %v165_v39 = vand.u32 2147483647, %v63_v35 }
 0xbe0   :  { %v934_v23 = vmul.f32 %v1530_v20, %v933_v22 }
 0xbe1   :  { %v168_v40 = vor.u32 1.1754944e-38, %v167_v37  ;;  %vm166_vm3 = vcmp.eq.f32.partialorder %v165_v39, 8.507059e+37 }
 0xbe2   :  { %v935_v24 = vadd.f32 %v1530_v20, %v934_v23 }
 0xbe4   :  { %v939_v31 = vsel %vm938_vm11, %v1530_v20, %v935_v24 }
 0xbe5   :  { %v944_v29 = vsel %vm941_vm12, %v943_v27, %v939_v31  ;;  %v1534_v0 = vpop.eup %1533 }
 0xbe6   :  { %v157_v1 = vmul.f32 %v1534_v0, %v63_v35  ;;  %vm162_vm14 = vweird.f32 %v1534_v0  ;;  %v999_v47 = vmul.f32 %v998_v46, %v944_v29 }
 0xbe7   :  { %vm163_vm2 = vmor %vm161_vm13, %vm162_vm14 }
 0xbe8   :  { %v158_v4 = vsub.f32 1.0, %v157_v1 }
 0xbea   :  { %v159_v36 = vmul.f32 %v1534_v0, %v158_v4 }
 0xbec   :  { %v160_v38 = vadd.f32 %v1534_v0, %v159_v36 }
 0xbee   :  { %v164_v41 = vsel %vm163_vm2, %v1534_v0, %v160_v38 }
 0xbef   :  { %v169_v42 = vsel %vm166_vm3, %v168_v40, %v164_v41 }
 0xbf0   :  { %193 = vst.msk [vmem:[#allocation3 + $0xc] sm:$0x3] %vm186_vm6, %v169_v42 }
 0xbf7   :  { %v1111_v52 = vld [vmem:[#allocation3 + $0xc] sm:$0x3] }
 0xc43   :  { %v1002_v28 = vpop.permute.xlu1 %1001 }
 0xc44   :  { %v1004_v30 = vmul.f32 %v1002_v28, %v944_v29 }
 0xc46   :  { %1006 = vrot.lane.b32.xlu1 %v1004_v30, %s1571_s4 }
 0xcb8   :  { %v1007_v48 = vpop.permute.xlu1 %1006 }
 0xcb9   :  { %v1853_v50 = vadd.f32 %v1007_v48, %v999_v47 }
 0xcbb   :  { %1535 = vtanh.f32 %v1853_v50  ;;  %1080 = vrot.lane.b32.xlu1 %v1853_v50, %s1572_s19 }
 0xcc1   :  { %v1536_v51 = vpop.eup %1535 }
 0xcc2   :  { %1012 = vrot.lane.b32.xlu2 %v1536_v51, %s1571_s4 }
 0xcca   :  { %1114 = vperm.xlu2 %1438, %v1111_v52  }
 0xd1c   :  { %v1013_v54 = vpop.permute.xlu2 %1012 }
 0xd1d   :  { %v1015_v55 = vmul.f32 %v1013_v54, %v944_v29 }
 0xd1f   :  { %1017 = vrot.lane.b32.xlu0 %v1015_v55, %s1573_s21 }
 0xd24   :  { %v1115_v7 = vpop.permute.xlu2 %1114 }
 0xd2d   :  { %v1081_v56 = vpop.permute.xlu1 %1080 }
 0xd2e   :  { %1423 = vmatmul.msk.f32.vlgmr.msra.gmra.mxu3 %vm292_vm15, %v1081_v56 }
 0xd91   :  { %v1018_v60 = vpop.permute.xlu0 %1017 }
 0xd92   :  { %1021 = vst.msk [vmem:[#allocation4 + $0xa] sm:$0x3] %vm400_vm0, %v1018_v60  ;;  %1421 = vmatmul.msk.f32.vlgmr.msra.gmra.mxu2 %vm292_vm15, %v1018_v60 }
 0xd99   :  { %v1275_v61 = vld [vmem:[#allocation4 + $0xa] sm:$0x3] }
 0xd9a   :  { %1304 = vst [vmem:[#allocation1 + $0x21] ss:$4 sm:$0xff] %v1275_v61  ;;  %1427 = vmatmul.msk.f32.vlgmr.msrb.gmra.mxu2 %vm292_vm15, %v1309_v62 }
 0xdb1   :  { %v1101_v2 = vpop.f32.mrf.mxu3 }
 0xdb2   :  { %v1102_v3 = vadd.f32 %v1446_v63, %v1101_v2 }
 0xdb4   :  { %1537 = vtanh.f32 %v1102_v3 }
 0xdba   :  { %v1538_v5 = vpop.eup %1537 }
 0xdbb   :  { %1106 = vrot.lane.b32.xlu1 %v1538_v5, %s1571_s4  ;;  %v1117_v49 = vmul.f32 %v1538_v5, %v1115_v7 }
 0xdbd   :  { %1119 = vrot.lane.b32.xlu2 %v1117_v49, %s1571_s4 }
 0xe15   :  { %v1047_v10 = vpop.f32.mrf.mxu2 }
 0xe16   :  { %v1050_v12 = vadd.f32 %v1047_v10, %v1023_v9 }
 0xe17   :  { %v1120_v61 = vpop.permute.xlu2 %1119 }
 0xe18   :  { %1539 = vtanh.f32 %v1050_v12  ;;  %v1422_v32 = vmul.f32 -1.442695, %v1050_v12  ;;  %v1448_v12 = vld [vmem:[%s1953_s6] ss:$0 sm:$0xff] }
 0xe1d   :  { %v1332_v14 = vpop.f32.mrf.mxu2 }
 0xe1e   :  { %v1540_v15 = vpop.eup %1539  ;;  %v1333_v16 = vadd.f32 %v1887_v13, %v1332_v14 }
 0xe1f   :  { %1125 = vrot.lane.b32.xlu0 %v1540_v15, %s1571_s4 }
 0xe20   :  { %v1429_v17 = vmul.f32 -1.442695, %v1333_v16 }
 0xe22   :  { %1541 = vpow2.f32 %v1429_v17 }
 0xe28   :  { %v1542_v18 = vpop.eup %1541 }
 0xe29   :  { %v1344_v6 = vadd.f32 1.0, %v1542_v18 }
 0xe2b   :  { %1543 = vrcp.f32 %v1344_v6  ;;  %v1357_v22 = vand.u32 2147483648, %v1344_v6  ;;  %v1355_v24 = vand.u32 2147483647, %v1344_v6  ;;  %vm1351_vm5 = vweird.f32 %v1344_v6 }
 0xe2c   :  { %1545 = vpow2.f32 %v1422_v32 }
 0xe2d   :  { %v1358_v26 = vor.u32 1.1754944e-38, %v1357_v22  ;;  %vm1356_vm7 = vcmp.eq.f32.partialorder %v1355_v24, 8.507059e+37  ;;  %v1107_v11 = vpop.permute.xlu1 %1106 }
 0xe2e   :  { %v1109_v60 = vsub.f32 %v1853_v50, %v1107_v11 }
 0xe30   :  { %v1122_v62 = vadd.f32 %v1120_v61, %v1109_v60 }
 0xe31   :  { %v1544_v19 = vpop.eup %1543 }
 0xe32   :  { %v1347_v20 = vmul.f32 %v1544_v19, %v1344_v6  ;;  %vm1352_vm4 = vweird.f32 %v1544_v19  ;;  %v1546_v33 = vpop.eup %1545  ;;  %v1147_v6 = vld [vmem:[#allocation2 + $0xe] sm:$0x3] }
 0xe33   :  { %vm1353_vm1 = vmor %vm1351_vm5, %vm1352_vm4  ;;  %v1054_v34 = vadd.f32 1.0, %v1546_v33 }
 0xe34   :  { %v1348_v21 = vsub.f32 1.0, %v1347_v20 }
 0xe35   :  { %1547 = vrcp.f32 %v1054_v34  ;;  %v1066_v37 = vand.u32 2147483648, %v1054_v34  ;;  %vm1060_vm9 = vweird.f32 %v1054_v34  ;;  %v1064_v38 = vand.u32 2147483647, %v1054_v34 }
 0xe36   :  { %v1349_v23 = vmul.f32 %v1544_v19, %v1348_v21  ;;  %1549 = vlog2.f32 %v49_v45 }
 0xe37   :  { %v1067_v40 = vor.u32 1.1754944e-38, %v1066_v37  ;;  %vm1065_vm11 = vcmp.eq.f32.partialorder %v1064_v38, 8.507059e+37 }
 0xe38   :  { %v1350_v25 = vadd.f32 %v1544_v19, %v1349_v23 }
 0xe3a   :  { %v1354_v31 = vsel %vm1353_vm1, %v1544_v19, %v1350_v25 }
 0xe3b   :  { %v1359_v27 = vsel %vm1356_vm7, %v1358_v26, %v1354_v31  ;;  %v1548_v35 = vpop.eup %1547 }
 0xe3c   :  { %v1378_v28 = vrot.slane %v1359_v27, 2  ;;  %v1379_v29 = vrot.slane %v1359_v27, 4  ;;  %v1380_v30 = vrot.slane %v1359_v27, 6  ;;  %1390 = vst.msk [vmem:[%s1956_s9] sm:$0x3] %vm186_vm6, %v1359_v27  ;;  %v1056_v0 = vmul.f32 %v1548_v35, %v1054_v34  ;;  %v1550_v46 = vpop.eup %1549 }
 0xe3d   :  { %vm1061_vm8 = vweird.f32 %v1548_v35  ;;  %v65_v47 = vmul.f32 0.6931472, %v1550_v46 }
 0xe3e   :  { %1391 = vst.msk [vmem:[%s1956_s9 + $0x2] sm:$0x3] %vm186_vm6, %v1378_v28  ;;  %v1057_v1 = vsub.f32 1.0, %v1056_v0  ;;  %vm1062_vm10 = vmor %vm1060_vm9, %vm1061_vm8 }
 0xe3f   :  { %1392 = vst.msk [vmem:[%s1956_s9 + $0x4] sm:$0x3] %vm186_vm6, %v1379_v29  ;;  %1551 = vrcp.f32 %v65_v47  ;;  %v182_v54 = vand.u32 2147483648, %v65_v47  ;;  %vm176_vm12 = vweird.f32 %v65_v47  ;;  %v180_v56 = vand.u32 2147483647, %v65_v47 }
 0xe40   :  { %1393 = vst.msk [vmem:[%s1956_s9 + $0x6] sm:$0x3] %vm186_vm6, %v1380_v30  ;;  %v1058_v4 = vmul.f32 %v1548_v35, %v1057_v1 }
 0xe41   :  { %v183_v57 = vor.u32 1.1754944e-38, %v182_v54  ;;  %vm181_vm2 = vcmp.eq.f32.partialorder %v180_v56, 8.507059e+37 }
 0xe42   :  { %v1059_v36 = vadd.f32 %v1548_v35, %v1058_v4 }
 0xe44   :  { %v1063_v39 = vsel %vm1062_vm10, %v1548_v35, %v1059_v36 }
 0xe45   :  { %v1068_v42 = vsel %vm1065_vm11, %v1067_v40, %v1063_v39  ;;  %v1552_v48 = vpop.eup %1551 }
 0xe46   :  { %v172_v51 = vmul.f32 %v1552_v48, %v65_v47  ;;  %vm177_vm13 = vweird.f32 %v1552_v48  ;;  %v1123_v63 = vmul.f32 %v1122_v62, %v1068_v42 }
 0xe47   :  { %vm178_vm14 = vmor %vm176_vm12, %vm177_vm13 }
 0xe48   :  { %v173_v52 = vsub.f32 1.0, %v172_v51 }
 0xe4a   :  { %v174_v53 = vmul.f32 %v1552_v48, %v173_v52 }
 0xe4c   :  { %v175_v55 = vadd.f32 %v1552_v48, %v174_v53 }
 0xe4e   :  { %v179_v58 = vsel %vm178_vm14, %v1552_v48, %v175_v55 }
 0xe4f   :  { %v184_v59 = vsel %vm181_vm2, %v183_v57, %v179_v58 }
 0xe50   :  { %194 = vst.msk [vmem:[#allocation3 + $0xe] sm:$0x3] %vm186_vm6, %v184_v59 }
 0xe57   :  { %v1235_v7 = vld [vmem:[#allocation3 + $0xe] sm:$0x3] }
 0xe91   :  { %v1126_v41 = vpop.permute.xlu0 %1125 }
 0xe92   :  { %v1128_v43 = vmul.f32 %v1126_v41, %v1068_v42 }
 0xe94   :  { %1130 = vrot.lane.b32.xlu0 %v1128_v43, %s1571_s4 }
 0xf06   :  { %v1131_v2 = vpop.permute.xlu0 %1130 }
 0xf07   :  { %v1133_v3 = vadd.f32 %v1131_v2, %v1123_v63 }
 0xf09   :  { %1553 = vtanh.f32 %v1133_v3  ;;  %1204 = vrot.lane.b32.xlu0 %v1133_v3, %s1572_s19 }
 0xf0f   :  { %v1554_v5 = vpop.eup %1553 }
 0xf10   :  { %1136 = vrot.lane.b32.xlu1 %v1554_v5, %s1571_s4 }
 0xf18   :  { %1238 = vperm.xlu1 %1437, %v1235_v7  }
 0xf7b   :  { %v1205_v49 = vpop.permute.xlu0 %1204 }
 0xf7c   :  { %1426 = vmatmul.msk.f32.vlgmr.msra.gmra.mxu1 %vm292_vm15, %v1205_v49 }
 0xf82   :  { %v1137_v8 = vpop.permute.xlu1 %1136 }
 0xf83   :  { %v1139_v9 = vmul.f32 %v1137_v8, %v1068_v42 }
 0xf85   :  { %1141 = vrot.lane.b32.xlu2 %v1139_v9, %s1573_s21 }
 0xf8a   :  { %v1239_v17 = vpop.permute.xlu1 %1238 }
 0xfdf   :  { %v1142_v50 = vpop.permute.xlu2 %1141 }
 0xfe0   :  { %1145 = vst.msk [vmem:[#allocation4 + $0xc] sm:$0x3] %vm400_vm0, %v1142_v50  ;;  %1424 = vmatmul.msk.f32.vlgmr.msrb.gmra.mxu0 %vm292_vm15, %v1142_v50 }
 0xfe7   :  { %v1276_v10 = vld [vmem:[#allocation4 + $0xc] sm:$0x3] }
 0xfe8   :  { %1306 = vst [vmem:[#allocation1 + $0x22] ss:$4 sm:$0xff] %v1276_v10 }
 0xff9   :  { %v1225_v14 = vpop.f32.mrf.mxu1 }
 0xffa   :  { %v1226_v15 = vadd.f32 %v1448_v12, %v1225_v14 }
 0xffc   :  { %1555 = vtanh.f32 %v1226_v15 }
0x1002   :  { %v1556_v16 = vpop.eup %1555 }
0x1003   :  { %1230 = vrot.lane.b32.xlu0 %v1556_v16, %s1571_s4  ;;  %v1241_v18 = vmul.f32 %v1556_v16, %v1239_v17 }
0x1005   :  { %1243 = vrot.lane.b32.xlu1 %v1241_v18, %s1571_s4 }
0x105d   :  { %v1171_v19 = vpop.f32.mrf.mxu0 }
0x105e   :  { %v1174_v20 = vadd.f32 %v1171_v19, %v1147_v6 }
0x1060   :  { %1557 = vtanh.f32 %v1174_v20  ;;  %v1425_v22 = vmul.f32 -1.442695, %v1174_v20 }
0x1062   :  { %1559 = vpow2.f32 %v1425_v22 }
0x1066   :  { %v1558_v21 = vpop.eup %1557 }
0x1067   :  { %1249 = vrot.lane.b32.xlu2 %v1558_v21, %s1571_s4 }
0x1068   :  { %v1560_v23 = vpop.eup %1559 }
0x1069   :  { %v1178_v24 = vadd.f32 1.0, %v1560_v23 }
0x106b   :  { %1561 = vrcp.f32 %v1178_v24  ;;  %v1190_v29 = vand.u32 2147483648, %v1178_v24  ;;  %vm1184_vm4 = vweird.f32 %v1178_v24  ;;  %v1188_v30 = vand.u32 2147483647, %v1178_v24 }
0x106d   :  { %v1191_v33 = vor.u32 1.1754944e-38, %v1190_v29  ;;  %vm1189_vm1 = vcmp.eq.f32.partialorder %v1188_v30, 8.507059e+37 }
0x1071   :  { %v1562_v25 = vpop.eup %1561 }
0x1072   :  { %v1180_v26 = vmul.f32 %v1562_v25, %v1178_v24  ;;  %vm1185_vm3 = vweird.f32 %v1562_v25 }
0x1073   :  { %vm1186_vm5 = vmor %vm1184_vm4, %vm1185_vm3 }
0x1074   :  { %v1181_v31 = vsub.f32 1.0, %v1180_v26 }
0x1075   :  { %v1231_v1 = vpop.permute.xlu0 %1230 }
0x1076   :  { %v1182_v27 = vmul.f32 %v1562_v25, %v1181_v31  ;;  %v1233_v4 = vsub.f32 %v1133_v3, %v1231_v1 }
0x1077   :  { %v1244_v36 = vpop.permute.xlu1 %1243 }
0x1078   :  { %v1183_v28 = vadd.f32 %v1562_v25, %v1182_v27  ;;  %v1246_v37 = vadd.f32 %v1244_v36, %v1233_v4 }
0x107a   :  { %v1187_v32 = vsel %vm1186_vm5, %v1562_v25, %v1183_v28 }
0x107b   :  { %v1192_v35 = vsel %vm1189_vm1, %v1191_v33, %v1187_v32 }
0x107c   :  { %v1247_v38 = vmul.f32 %v1246_v37, %v1192_v35 }
0x10c1   :  { %v1250_v34 = vpop.permute.xlu2 %1249 }
0x10c2   :  { %v1252_v0 = vmul.f32 %v1250_v34, %v1192_v35 }
0x10c4   :  { %1254 = vrot.lane.b32.xlu2 %v1252_v0, %s1571_s4 }
0x111e   :  { %v1255_v39 = vpop.permute.xlu2 %1254 }
0x111f   :  { %v1257_v40 = vadd.f32 %v1255_v39, %v1247_v38 }
0x1121   :  { %1563 = vtanh.f32 %v1257_v40 }
0x1127   :  { %v1564_v41 = vpop.eup %1563 }
0x1128   :  { %1260 = vrot.lane.b32.xlu0 %v1564_v41, %s1571_s4 }
0x119a   :  { %v1261_v42 = vpop.permute.xlu0 %1260 }
0x119b   :  { %v1263_v43 = vmul.f32 %v1261_v42, %v1192_v35 }
0x119d   :  { %1265 = vrot.lane.b32.xlu1 %v1263_v43, %s1573_s21 }
0x120f   :  { %v1266_v44 = vpop.permute.xlu1 %1265 }
0x1210   :  { %1269 = vst.msk [vmem:[#allocation4 + $0xe] sm:$0x3] %vm400_vm0, %v1266_v44 }
0x1217   :  { %v1277_v45 = vld [vmem:[#allocation4 + $0xe] sm:$0x3] }
0x1218   :  { %1308 = vst [vmem:[#allocation1 + $0x23] ss:$4 sm:$0xff] %v1277_v45 }
0x121f   :  { %v1310_v46 = vld.sshfl [vmem:[#allocation1 + $0x20] sm:$0xff pattern:$0x73625140] }
0x1220   :  { %1428 = vmatmul.msk.f32.gmra.mxu2 %vm292_vm15, %v1310_v46 }
0x12a3   :  { %v1335_v47 = vpop.f32.mrf.mxu2 }
0x12a4   :  { %v1336_v48 = vadd.f32 %v1887_v13, %v1335_v47 }
0x12a6   :  { %v1430_v51 = vmul.f32 -1.442695, %v1336_v48 }
0x12a8   :  { %1565 = vpow2.f32 %v1430_v51 }
0x12ae   :  { %v1566_v52 = vpop.eup %1565 }
0x12af   :  { %v1345_v53 = vadd.f32 1.0, %v1566_v52 }
0x12b1   :  { %1567 = vrcp.f32 %v1345_v53  ;;  %v1372_v57 = vand.u32 2147483648, %v1345_v53  ;;  %v1370_v59 = vand.u32 2147483647, %v1345_v53  ;;  %vm1366_vm0 = vweird.f32 %v1345_v53 }
0x12b3   :  { %v1373_v60 = vor.u32 1.1754944e-38, %v1372_v57  ;;  %vm1371_vm15 = vcmp.eq.f32.partialorder %v1370_v59, 8.507059e+37 }
0x12b7   :  { %v1568_v54 = vpop.eup %1567 }
0x12b8   :  { %v1362_v55 = vmul.f32 %v1568_v54, %v1345_v53  ;;  %vm1367_vm7 = vweird.f32 %v1568_v54 }
0x12b9   :  { %vm1368_vm8 = vmor %vm1366_vm0, %vm1367_vm7 }
0x12ba   :  { %v1363_v56 = vsub.f32 1.0, %v1362_v55 }
0x12bc   :  { %v1364_v58 = vmul.f32 %v1568_v54, %v1363_v56 }
0x12be   :  { %v1365_v11 = vadd.f32 %v1568_v54, %v1364_v58 }
0x12c0   :  { %v1369_v61 = vsel %vm1368_vm8, %v1568_v54, %v1365_v11 }
0x12c1   :  { %v1374_v62 = vsel %vm1371_vm15, %v1373_v60, %v1369_v61 }
0x12c2   :  { %v1381_v13 = vrot.slane %v1374_v62, 2  ;;  %v1382_v63 = vrot.slane %v1374_v62, 4  ;;  %v1383_v2 = vrot.slane %v1374_v62, 6  ;;  %1394 = vst.msk [vmem:[%s1956_s9 + $0x8] sm:$0x3] %vm186_vm6, %v1374_v62 }
0x12c4   :  { %1395 = vst.msk [vmem:[%s1956_s9 + $0xa] sm:$0x3] %vm186_vm6, %v1381_v13 }
0x12c5   :  { %1396 = vst.msk [vmem:[%s1956_s9 + $0xc] sm:$0x3] %vm186_vm6, %v1382_v63 }
0x12c6   :  { %1397 = vst.msk [vmem:[%s1956_s9 + $0xe] sm:$0x3] %vm186_vm6, %v1383_v2 }

</bundles_post_ra>
